<compile_context>
chip_gen: v7x
topology: tpu7x:2x2x1
jax: 0.10.0
libtpu: 0.0.40
codegen_flags: <defaults>
</compile_context>

<pallas_src>
import functools

import jax
import jax.numpy as jnp
from jax.experimental import pallas as pl
from jax.experimental.pallas import tpu as pltpu

IN_DIM = 128
H1_DIM = 256
H2_DIM = 512
OUT_DIM = 784
NEG_SLOPE = 0.2


def _round_up(n, m):
    return ((n + m - 1) // m) * m


def generator_kernel(x_ref, w1_ref, b1_ref, w2_ref, b2_ref, w3_ref, b3_ref, o_ref):
    """Fused 3-layer MLP: bf16 MXU matmuls (f32 accumulation), VPU LeakyReLU, EUP tanh."""
    x = x_ref[...].astype(jnp.bfloat16)

    # fc1 + LeakyReLU(0.2)   (K=128 only half-fills the 256-deep MXU on v6e/v7x;
    # fc1 is ~5% of FLOPs so this costs <3% overall -- documented, not chased.)
    h1 = jnp.dot(x, w1_ref[...], preferred_element_type=jnp.float32) + b1_ref[...]
    h1 = jnp.where(h1 > 0, h1, NEG_SLOPE * h1)

    # fc2 + LeakyReLU(0.2)
    h2 = jnp.dot(h1.astype(jnp.bfloat16), w2_ref[...],
                 preferred_element_type=jnp.float32) + b2_ref[...]
    h2 = jnp.where(h2 > 0, h2, NEG_SLOPE * h2)

    # fc3 + tanh, written at the true 784 width (no pad columns).
    h3 = jnp.dot(h2.astype(jnp.bfloat16), w3_ref[...],
                 preferred_element_type=jnp.float32) + b3_ref[...]
    o_ref[...] = jnp.tanh(h3).astype(o_ref.dtype)


@functools.partial(jax.jit, static_argnames=("tile_b", "out_dtype"))
def _generator_forward_impl(x, prepared, tile_b, out_dtype):
    w1, b1, w2, b2, w3, b3 = prepared
    B = x.shape[0]
    grid_b = pl.cdiv(B, tile_b)

    flops = 2 * B * (IN_DIM * H1_DIM + H1_DIM * H2_DIM + H2_DIM * OUT_DIM)
    bytes_accessed = (
        x.size * x.dtype.itemsize
        + B * OUT_DIM * jnp.dtype(out_dtype).itemsize
        + (w1.size + w2.size + w3.size) * 2          # bf16 weights
        + (b1.size + b2.size + b3.size) * 4          # f32 biases
    )

    return pl.pallas_call(
        generator_kernel,
        out_shape=jax.ShapeDtypeStruct((B, OUT_DIM), out_dtype),
        grid_spec=pltpu.PrefetchScalarGridSpec(
            num_scalar_prefetch=0,
            grid=(grid_b,),
            in_specs=[
                pl.BlockSpec((tile_b, IN_DIM), lambda i: (i, 0)),
                # Weights / biases: constant index maps -> VMEM-resident across steps.
                pl.BlockSpec((IN_DIM, H1_DIM), lambda i: (0, 0)),
                pl.BlockSpec((1, H1_DIM), lambda i: (0, 0)),
                pl.BlockSpec((H1_DIM, H2_DIM), lambda i: (0, 0)),
                pl.BlockSpec((1, H2_DIM), lambda i: (0, 0)),
                pl.BlockSpec((H2_DIM, OUT_DIM), lambda i: (0, 0)),
                pl.BlockSpec((1, OUT_DIM), lambda i: (0, 0)),
            ],
            out_specs=pl.BlockSpec((tile_b, OUT_DIM), lambda i: (i, 0)),
        ),
        compiler_params=pltpu.CompilerParams(
            dimension_semantics=("parallel",),      # megacore / dual-TC sharding
            vmem_limit_bytes=32 * 1024 * 1024,      # headroom above v5e's 16 MiB default
        ),
        cost_estimate=pl.CostEstimate(
            flops=flops,
            transcendentals=B * OUT_DIM,            # tanh
            bytes_accessed=bytes_accessed,
        ),
    )(x, w1, b1, w2, b2, w3, b3)


def _auto_tile(B):
    # >= 2 grid steps so both v7x TensorCores get work; cap at 512 rows
    # (fills the MXU M axis, amortizes per-step overhead, ~10 MiB peak VMEM).
    half = _round_up(-(-B // 2), 8)
    return int(max(8, min(512, half)))


def generator_forward(x, prepared_params, tile_b=None, out_dtype=jnp.float32):
    """x: (B, 128) float32 -> (B, 784) `out_dtype` (default float32)."""
    if tile_b is None:
        tile_b = _auto_tile(x.shape[0])
    return _generator_forward_impl(x, prepared_params, int(tile_b), out_dtype)


def prepare_params(params):
    """One-time prep (call at init / after every parameter update, NOT per forward):
    cast weights to bf16 for the MXU, reshape biases to (1, F) f32 rows."""
    w1, b1, w2, b2, w3, b3 = params
    row = lambda b: jnp.asarray(b, jnp.float32).reshape(1, -1)
    return (jnp.asarray(w1, jnp.bfloat16), row(b1),
            jnp.asarray(w2, jnp.bfloat16), row(b2),
            jnp.asarray(w3, jnp.bfloat16), row(b3))


def init_params(key):
    """Deterministic init mimicking nn.Linear default: U(-1/sqrt(fan_in), 1/sqrt(fan_in)).
    Weights stored (in, out) so the kernel computes x @ W + b directly."""
    ks = jax.random.split(key, 6)

    def linear(kw, kb, fan_in, fan_out):
        bound = 1.0 / jnp.sqrt(float(fan_in))
        w = jax.random.uniform(kw, (fan_in, fan_out), jnp.float32, -bound, bound)
        b = jax.random.uniform(kb, (fan_out,), jnp.float32, -bound, bound)
        return w, b

    w1, b1 = linear(ks[0], ks[1], IN_DIM, H1_DIM)
    w2, b2 = linear(ks[2], ks[3], H1_DIM, H2_DIM)
    w3, b3 = linear(ks[4], ks[5], H2_DIM, OUT_DIM)
    return (w1, b1, w2, b2, w3, b3)


def reference_forward(x, params):
    """Pure-JAX f32 reference (matches the PyTorch module semantics)."""
    w1, b1, w2, b2, w3, b3 = params
    h = x @ w1 + b1
    h = jnp.where(h > 0, h, NEG_SLOPE * h)
    h = h @ w2 + b2
    h = jnp.where(h > 0, h, NEG_SLOPE * h)
    return jnp.tanh(h @ w3 + b3)


if __name__ == "__main__":
    key = jax.random.PRNGKey(0)
    k_params, k_x = jax.random.split(key)

    params = init_params(k_params)
    prepared = prepare_params(params)   # one-time bf16 cast / bias reshape

    B = 64  # small test batch; auto tile -> tile_b=32, grid=(2,)
    x = jax.random.normal(k_x, (B, IN_DIM), jnp.float32)

    out = generator_forward(x, prepared)
    out = jax.block_until_ready(out)

    ref = reference_forward(x, params)
    assert out.shape == (B, OUT_DIM), out.shape
    assert out.dtype == jnp.float32, out.dtype
    # bf16 matmul inputs (f32 accumulation) vs f32 reference: tanh-bounded output,
    # observed error << 1e-2.
    assert jnp.allclose(out, ref, atol=2e-2, rtol=2e-2), "mismatch vs reference"

    print("KERNEL_OK")
</pallas_src>

<mosaic_0001>
module attributes {stable_mosaic.version = 11 : i64} {
  func.func @generator_kernel(%arg0: i32, %arg1: memref<32x128xf32, #tpu.memory_space<vmem>>, %arg2: memref<128x256xbf16, #tpu.memory_space<vmem>>, %arg3: memref<1x256xf32, #tpu.memory_space<vmem>>, %arg4: memref<256x512xbf16, #tpu.memory_space<vmem>>, %arg5: memref<1x512xf32, #tpu.memory_space<vmem>>, %arg6: memref<512x784xbf16, #tpu.memory_space<vmem>>, %arg7: memref<1x784xf32, #tpu.memory_space<vmem>>, %arg8: memref<32x784xf32, #tpu.memory_space<vmem>>) attributes {dimension_semantics = [#tpu.dimension_semantics<parallel>], iteration_bounds = array<i64: 2>, scalar_prefetch = 0 : i64, scratch_operands = 0 : i64, tpu.core_type = #tpu.core_type<tc>, window_params = [{transform_indices = @transform_0, window_bounds = array<i64: 32, 128>}, {pipeline_mode = #tpu.pipeline_mode<synchronous>, transform_indices = @transform_1, window_bounds = array<i64: 128, 256>}, {pipeline_mode = #tpu.pipeline_mode<synchronous>, transform_indices = @transform_2, window_bounds = array<i64: 1, 256>}, {pipeline_mode = #tpu.pipeline_mode<synchronous>, transform_indices = @transform_3, window_bounds = array<i64: 256, 512>}, {pipeline_mode = #tpu.pipeline_mode<synchronous>, transform_indices = @transform_4, window_bounds = array<i64: 1, 512>}, {pipeline_mode = #tpu.pipeline_mode<synchronous>, transform_indices = @transform_5, window_bounds = array<i64: 512, 784>}, {pipeline_mode = #tpu.pipeline_mode<synchronous>, transform_indices = @transform_6, window_bounds = array<i64: 1, 784>}, {transform_indices = @transform_7, window_bounds = array<i64: 32, 784>}]} {
    %c0 = arith.constant 0 : index
    %c0_0 = arith.constant 0 : index
    %0 = vector.load %arg1[%c0, %c0_0] : memref<32x128xf32, #tpu.memory_space<vmem>>, vector<32x128xf32>
    %1 = arith.truncf %0 : vector<32x128xf32> to vector<32x128xbf16>
    %c0_1 = arith.constant 0 : index
    %c0_2 = arith.constant 0 : index
    %2 = vector.load %arg2[%c0_1, %c0_2] : memref<128x256xbf16, #tpu.memory_space<vmem>>, vector<128x256xbf16>
    %cst = arith.constant dense<0.000000e+00> : vector<32x256xf32>
    %3 = tpu.matmul %1, %2, %cst {dimension_numbers = #tpu.dot_dimension_numbers<[1], [0], [0], [1], [0, 0, 1, 1], [], []>} : vector<32x128xbf16>, vector<128x256xbf16>, vector<32x256xf32> -> vector<32x256xf32>
    %c0_3 = arith.constant 0 : index
    %c0_4 = arith.constant 0 : index
    %4 = vector.load %arg3[%c0_3, %c0_4] : memref<1x256xf32, #tpu.memory_space<vmem>>, vector<1x256xf32>
    %5 = vector.broadcast %4 : vector<1x256xf32> to vector<32x256xf32>
    %6 = arith.addf %3, %5 : vector<32x256xf32>
    %cst_5 = arith.constant 0.000000e+00 : f32
    %7 = vector.broadcast %cst_5 : f32 to vector<32x256xf32>
    %8 = arith.cmpf ogt, %6, %7 : vector<32x256xf32>
    %cst_6 = arith.constant 2.000000e-01 : f32
    %9 = vector.broadcast %cst_6 : f32 to vector<32x256xf32>
    %10 = arith.mulf %9, %6 : vector<32x256xf32>
    %11 = arith.select %8, %6, %10 : vector<32x256xi1>, vector<32x256xf32>
    %12 = arith.truncf %11 : vector<32x256xf32> to vector<32x256xbf16>
    %c0_7 = arith.constant 0 : index
    %c0_8 = arith.constant 0 : index
    %13 = vector.load %arg4[%c0_7, %c0_8] : memref<256x512xbf16, #tpu.memory_space<vmem>>, vector<256x512xbf16>
    %cst_9 = arith.constant dense<0.000000e+00> : vector<32x512xf32>
    %14 = tpu.matmul %12, %13, %cst_9 {dimension_numbers = #tpu.dot_dimension_numbers<[1], [0], [0], [1], [0, 0, 1, 1], [], []>} : vector<32x256xbf16>, vector<256x512xbf16>, vector<32x512xf32> -> vector<32x512xf32>
    %c0_10 = arith.constant 0 : index
    %c0_11 = arith.constant 0 : index
    %15 = vector.load %arg5[%c0_10, %c0_11] : memref<1x512xf32, #tpu.memory_space<vmem>>, vector<1x512xf32>
    %16 = vector.broadcast %15 : vector<1x512xf32> to vector<32x512xf32>
    %17 = arith.addf %14, %16 : vector<32x512xf32>
    %cst_12 = arith.constant 0.000000e+00 : f32
    %18 = vector.broadcast %cst_12 : f32 to vector<32x512xf32>
    %19 = arith.cmpf ogt, %17, %18 : vector<32x512xf32>
    %cst_13 = arith.constant 2.000000e-01 : f32
    %20 = vector.broadcast %cst_13 : f32 to vector<32x512xf32>
    %21 = arith.mulf %20, %17 : vector<32x512xf32>
    %22 = arith.select %19, %17, %21 : vector<32x512xi1>, vector<32x512xf32>
    %23 = arith.truncf %22 : vector<32x512xf32> to vector<32x512xbf16>
    %c0_14 = arith.constant 0 : index
    %c0_15 = arith.constant 0 : index
    %24 = vector.load %arg6[%c0_14, %c0_15] : memref<512x784xbf16, #tpu.memory_space<vmem>>, vector<512x784xbf16>
    %cst_16 = arith.constant dense<0.000000e+00> : vector<32x784xf32>
    %25 = tpu.matmul %23, %24, %cst_16 {dimension_numbers = #tpu.dot_dimension_numbers<[1], [0], [0], [1], [0, 0, 1, 1], [], []>} : vector<32x512xbf16>, vector<512x784xbf16>, vector<32x784xf32> -> vector<32x784xf32>
    %c0_17 = arith.constant 0 : index
    %c0_18 = arith.constant 0 : index
    %26 = vector.load %arg7[%c0_17, %c0_18] : memref<1x784xf32, #tpu.memory_space<vmem>>, vector<1x784xf32>
    %27 = vector.broadcast %26 : vector<1x784xf32> to vector<32x784xf32>
    %28 = arith.addf %25, %27 : vector<32x784xf32>
    %29 = math.tanh %28 : vector<32x784xf32>
    %c0_19 = arith.constant 0 : index
    %c0_20 = arith.constant 0 : index
    %30 = vector.load %arg8[%c0_19, %c0_20] : memref<32x784xf32, #tpu.memory_space<vmem>>, vector<32x784xf32>
    tpu.vector_store %arg8[%c0_19, %c0_20], %29 {strides = array<i32>} : memref<32x784xf32, #tpu.memory_space<vmem>>, vector<32x784xf32>,
    return
  }
  func.func @transform_0(%arg0: i32) -> (i32, i32) {
    %c0_i32 = arith.constant 0 : i32
    %c0_i32_0 = arith.constant 0 : i32
    return %arg0, %c0_i32 : i32, i32
  }
  func.func @transform_1(%arg0: i32) -> (i32, i32) {
    %c0_i32 = arith.constant 0 : i32
    %c0_i32_0 = arith.constant 0 : i32
    %c0_i32_1 = arith.constant 0 : i32
    return %c0_i32, %c0_i32_0 : i32, i32
  }
  func.func @transform_2(%arg0: i32) -> (i32, i32) {
    %c0_i32 = arith.constant 0 : i32
    %c0_i32_0 = arith.constant 0 : i32
    %c0_i32_1 = arith.constant 0 : i32
    return %c0_i32, %c0_i32_0 : i32, i32
  }
  func.func @transform_3(%arg0: i32) -> (i32, i32) {
    %c0_i32 = arith.constant 0 : i32
    %c0_i32_0 = arith.constant 0 : i32
    %c0_i32_1 = arith.constant 0 : i32
    return %c0_i32, %c0_i32_0 : i32, i32
  }
  func.func @transform_4(%arg0: i32) -> (i32, i32) {
    %c0_i32 = arith.constant 0 : i32
    %c0_i32_0 = arith.constant 0 : i32
    %c0_i32_1 = arith.constant 0 : i32
    return %c0_i32, %c0_i32_0 : i32, i32
  }
  func.func @transform_5(%arg0: i32) -> (i32, i32) {
    %c0_i32 = arith.constant 0 : i32
    %c0_i32_0 = arith.constant 0 : i32
    %c0_i32_1 = arith.constant 0 : i32
    return %c0_i32, %c0_i32_0 : i32, i32
  }
  func.func @transform_6(%arg0: i32) -> (i32, i32) {
    %c0_i32 = arith.constant 0 : i32
    %c0_i32_0 = arith.constant 0 : i32
    %c0_i32_1 = arith.constant 0 : i32
    return %c0_i32, %c0_i32_0 : i32, i32
  }
  func.func @transform_7(%arg0: i32) -> (i32, i32) {
    %c0_i32 = arith.constant 0 : i32
    %c0_i32_0 = arith.constant 0 : i32
    return %arg0, %c0_i32 : i32, i32
  }
}

</mosaic_0001>

<bundles_post_ra>
// kernel: _generator_forward_impl.1
= control target key start
LH: loop header
LB: loop body
LE: loop exit
PB: predicated region body
PF: predicated region fallthrough
CT: control target
= control target key end

     0   :  { %12 = vsyncpa [#allocation3], 0  ;;  %s5271_s0 = inlined_call_operand.vmem [shape: f32[64,128], index: 0, kind: input, shape index: {}]   ;;  %s5272_s1 = inlined_call_operand.vmem [shape: bf16[128,256], index: 1, kind: input, shape index: {}]   ;;  %s5273_s2 = inlined_call_operand.vmem [shape: f32[1,256], index: 2, kind: input, shape index: {}]   ;;  %s5274_s3 = inlined_call_operand.vmem [shape: bf16[256,512], index: 3, kind: input, shape index: {}]   ;;  %s5275_s4 = inlined_call_operand.vmem [shape: f32[1,512], index: 4, kind: input, shape index: {}]   ;;  %s5276_s5 = inlined_call_operand.vmem [shape: bf16[512,784], index: 5, kind: input, shape index: {}]   ;;  %s5277_s6 = inlined_call_operand.vmem [shape: f32[1,784], index: 6, kind: input, shape index: {}]   ;;  %s5278_s7 = inlined_call_operand.hbm [shape: f32[64,784], index: 7, kind: output, shape index: {}]  }
   0x1   :  { %14 = vsyncpa [#allocation3 + $0x1], 0  ;;  %s4106_s24 = smov 0   ;;  %s4108_s25 = smov 0  }
   0x2   :  { %s4110_s26 = smov 0   ;;  %s4112_s27 = smov 0  }
   0x3 LB: > { %s4127_s28 = sadd.s32 4294967295, %s4060_s27   ;;  %s3039_s29 = sadd.s32 4294967294, %s4060_s27   ;;  %s4060_s27 = sphi %s4112_s27, %s5284_s27   ;;  %s4056_s26 = sphi %s4110_s26, %s5283_s26   ;;  %s4052_s25 = sphi %s4108_s25, %s5282_s25   ;;  %s4048_s24 = sphi %s4106_s24, %s5281_s24  }
   0x4   : > { %s4131_s30 = sadd.s32 1, %s4060_s27   ;;  %s179_s8 = sadd.s32 1, %s4056_s26 }
   0x5   : > { %s176_s9 = ssub.s32 %s4060_s27, %s4131_s30  ;;  %p189_p0 = scmp.ne.s32.totalorder %s4056_s26, %s4052_s25 }
   0x6   : > { %p177_p1 = scmp.eq.s32.totalorder %s176_s9, 0  ;;  %p190_p2 = scmp.eq.s32.totalorder %s4127_s28, 1 }
   0x7   : > { %p195_p3 = scmp.ne.s32.totalorder %s4052_s25, %s4048_s24  ;;  %p196_p4 = scmp.eq.s32.totalorder %s3039_s29, 1 }
   0x8   : > { %s4142_s10 = scalar_select %p177_p1, %s4056_s26, %s179_s8  }
   0x9   : > { %p4144_p5 = por %p190_p2, %p189_p0  ;;  %p4148_p6 = por %p196_p4, %p195_p3 }
   0xa   : > { %p3042_p7 = scmp.ge.s32.totalorder %s4060_s27, 1  ;;  %p241_p8 = scmp.lt.s32.totalorder %s4060_s27, 3 }
   0xc   : > { %p242_p9 = pnand %p3042_p7, %p241_p8 }
   0xd   : > { %v3502_v0 = vld [vmem:[%s5272_s1 + $0x4] ss:$8 sps:$4 sm:$0xff] (!%p242_p9)   ;;  %v3504_v1 = vld [vmem:[%s5272_s1] ss:$8 sps:$4 sm:$0xff] (!%p242_p9)   ;;  %v4062_v2 = vmov (!%p242_p9), 0   ;;  %s3043_s13 = sshll.u32 (!%p242_p9), %s4127_s28, 2 }
   0xe   : > { %245 = sbr.rel (%p242_p9) target bundleno = 939 (0x3ab), region = 48  ;;  %427 = vmatprep.mubr.bf16.mxu0 (!%p242_p9), %v4062_v2  ;;  %395 = vmatprep.subr.bf16.mxu0 (!%p242_p9), %v3502_v0  ;;  %v3505_v3 = vld [vmem:[%s5272_s1 + $0x14] ss:$8 sps:$4 sm:$0xff] (!%p242_p9)   ;;  %v3507_v4 = vld [vmem:[%s5272_s1 + $0x10] ss:$8 sps:$4 sm:$0xff] (!%p242_p9)   ;;  %p274_p10 = scmp.lt.s32.totalorder (!%p242_p9), %s3043_s13, 7 }
   0xf   : > { %396 = vmatpush1.bf16.msra.mxu0 (!%p242_p9), %v3504_v1  ;;  %v3508_v5 = vld [vmem:[%s5272_s1 + $0x24] ss:$8 sps:$4 sm:$0xff] (!%p242_p9)   ;;  %v3510_v6 = vld [vmem:[%s5272_s1 + $0x20] ss:$8 sps:$4 sm:$0xff] (!%p242_p9)   ;;  %v3511_v7 = vld [vmem:[%s5272_s1 + $0x34] ss:$8 sps:$4 sm:$0xff] (!%p242_p9)  }
  0x10   : > { %397 = vmatprep.subr.bf16.mxu0 (!%p242_p9), %v3505_v3  ;;  %v3513_v8 = vld [vmem:[%s5272_s1 + $0x30] ss:$8 sps:$4 sm:$0xff] (!%p242_p9)   ;;  %v3514_v9 = vld [vmem:[%s5272_s1 + $0x44] ss:$8 sps:$4 sm:$0xff] (!%p242_p9)   ;;  %v3516_v11 = vld [vmem:[%s5272_s1 + $0x40] ss:$8 sps:$4 sm:$0xff] (!%p242_p9)  }
  0x11   : > { %v3526_v10 = vld [vmem:[%s5274_s3 + $0x4] ss:$16 sps:$4 sm:$0xff] (!%p242_p9)   ;;  %v3531_v12 = vld [vmem:[%s5274_s3] ss:$16 sps:$4 sm:$0xff] (!%p242_p9)   ;;  %v3530_v28 = vld [vmem:[%s5274_s3 + $0xc] ss:$16 sps:$4 sm:$0xff] (!%p242_p9)  }
  0x12   : > { %882 = vmatprep.subr.bf16.mxu1 (!%p242_p9), %v3526_v10  ;;  %v3532_v13 = vld [vmem:[%s5274_s3 + $0x24] ss:$16 sps:$4 sm:$0xff] (!%p242_p9)   ;;  %v3537_v15 = vld [vmem:[%s5274_s3 + $0x20] ss:$16 sps:$4 sm:$0xff] (!%p242_p9)   ;;  %v3528_v32 = vld [vmem:[%s5274_s3 + $0x8] ss:$16 sps:$4 sm:$0xff] (!%p242_p9)  }
  0x13   : > { %398 = vmatpush1.bf16.msra.mxu0 (!%p242_p9), %v3507_v4  ;;  %v3517_v14 = vld [vmem:[%s5272_s1 + $0x54] ss:$8 sps:$4 sm:$0xff] (!%p242_p9)   ;;  %883 = vmatpush1.bf16.msra.mxu1 (!%p242_p9), %v3531_v12  ;;  %v3519_v17 = vld [vmem:[%s5272_s1 + $0x50] ss:$8 sps:$4 sm:$0xff] (!%p242_p9)   ;;  %v3520_v18 = vld [vmem:[%s5272_s1 + $0x64] ss:$8 sps:$4 sm:$0xff] (!%p242_p9)  }
  0x14   : > { %399 = vmatprep.subr.bf16.mxu0 (!%p242_p9), %v3508_v5  ;;  %884 = vmatprep.subr.bf16.mxu1 (!%p242_p9), %v3532_v13  ;;  %v3538_v16 = vld [vmem:[%s5274_s3 + $0x44] ss:$16 sps:$4 sm:$0xff] (!%p242_p9)   ;;  %v3543_v19 = vld [vmem:[%s5274_s3 + $0x40] ss:$16 sps:$4 sm:$0xff] (!%p242_p9)   ;;  %v3536_v33 = vld [vmem:[%s5274_s3 + $0x2c] ss:$16 sps:$4 sm:$0xff] (!%p242_p9)  }
  0x15   : > { %s5286_s13 = smov (!%p274_p10, %s3043_s13), 7  ;;  %v3544_v20 = vld [vmem:[%s5274_s3 + $0x64] ss:$16 sps:$4 sm:$0xff]   ;;  %v3522_v21 = vld [vmem:[%s5272_s1 + $0x60] ss:$8 sps:$4 sm:$0xff]   ;;  %s270_s19 = sand.u32 1, %s4052_s25  }
  0x16   : > { %s3044_s8 = sshll.u32 %s5286_s13, 3  ;;  %v3523_v22 = vld [vmem:[%s5272_s1 + $0x74] ss:$8 sps:$4 sm:$0xff]   ;;  %v3549_v23 = vld [vmem:[%s5274_s3 + $0x60] ss:$16 sps:$4 sm:$0xff]   ;;  %s3458_s20 = smul.u32 224, %s270_s19 }
  0x17   : > { %400 = vmatpush1.bf16.msra.mxu0 %v3510_v6  ;;  %885 = vmatpush1.bf16.msra.mxu1 %v3537_v15  ;;  %s277_s21 = scalar_lea.vmem %s5271_s0, %s3044_s8  ;;  %v3550_v24 = vld [vmem:[%s5274_s3 + $0x84] ss:$16 sps:$4 sm:$0xff]   ;;  %v3525_v25 = vld [vmem:[%s5272_s1 + $0x70] ss:$8 sps:$4 sm:$0xff]   ;;  %v3542_v39 = vld [vmem:[%s5274_s3 + $0x4c] ss:$16 sps:$4 sm:$0xff]  }
  0x18   : > { %401 = vmatprep.subr.bf16.mxu0 %v3511_v7  ;;  %886 = vmatprep.subr.bf16.mxu1 %v3538_v16  ;;  %v281_v26 = vld [vmem:[%s277_s21] sm:$0xff]  ;;  %v282_v27 = vld [vmem:[%s277_s21 + $0x8] sm:$0xff]  ;;  %v283_v36 = vld [vmem:[%s277_s21 + $0x10] sm:$0xff]  ;;  %s5183_s13 = scalar_lea.vmem [#allocation2], %s3458_s20  ;;  %s3459_s22 = smul.u32 3584, %s4127_s28 }
  0x19   : > { %v3555_v29 = vld [vmem:[%s5274_s3 + $0x80] ss:$16 sps:$4 sm:$0xff]   ;;  %v3556_v30 = vld [vmem:[%s5274_s3 + $0xa4] ss:$16 sps:$4 sm:$0xff]   ;;  %v285_v31 = vpack.c.bf16 %v282_v27, %v281_v26  ;;  %v284_v37 = vld [vmem:[%s277_s21 + $0x18] sm:$0xff]  ;;  %s2977_s21 = sshll.u32 %s5183_s13, 4  ;;  %s5218_s21 = int_to_ptr.vmem [resolvable:$true] %s2977_s21 }
  0x1a   : > { %v3561_v34 = vld [vmem:[%s5274_s3 + $0xa0] ss:$16 sps:$4 sm:$0xff]   ;;  %v3562_v35 = vld [vmem:[%s5274_s3 + $0xc4] ss:$16 sps:$4 sm:$0xff]   ;;  %v3534_v38 = vld [vmem:[%s5274_s3 + $0x28] ss:$16 sps:$4 sm:$0xff]   ;;  %v286_v42 = vpack.c.bf16 %v284_v37, %v283_v36  ;;  %s5224_s9 = scalar_lea.hbm %s5278_s7, %s3459_s22 }
  0x1b   : > { %402 = vmatpush1.bf16.msra.mxu0 %v3513_v8  ;;  %887 = vmatpush1.bf16.msra.mxu1 %v3543_v19  ;;  %v3567_v40 = vld [vmem:[%s5274_s3 + $0xc0] ss:$16 sps:$4 sm:$0xff]   ;;  %v3568_v41 = vld [vmem:[%s5274_s3 + $0xe4] ss:$16 sps:$4 sm:$0xff]   ;;  %v3540_v43 = vld [vmem:[%s5274_s3 + $0x48] ss:$16 sps:$4 sm:$0xff]  }
  0x1c   : > { %403 = vmatprep.subr.bf16.mxu0 %v3514_v9  ;;  %888 = vmatprep.subr.bf16.mxu1 %v3544_v20  ;;  %v3548_v44 = vld [vmem:[%s5274_s3 + $0x6c] ss:$16 sps:$4 sm:$0xff]   ;;  %v3573_v45 = vld [vmem:[%s5274_s3 + $0xe0] ss:$16 sps:$4 sm:$0xff]   ;;  %v3574_v46 = vld [vmem:[%s5274_s3 + $0x104] ss:$16 sps:$4 sm:$0xff]  }
  0x1d   : > { %v3546_v47 = vld [vmem:[%s5274_s3 + $0x68] ss:$16 sps:$4 sm:$0xff]   ;;  %v3554_v48 = vld [vmem:[%s5274_s3 + $0x8c] ss:$16 sps:$4 sm:$0xff]   ;;  %v3579_v49 = vld [vmem:[%s5274_s3 + $0x100] ss:$16 sps:$4 sm:$0xff]  }
  0x1e   : > { %v3580_v50 = vld [vmem:[%s5274_s3 + $0x124] ss:$16 sps:$4 sm:$0xff]   ;;  %v3552_v51 = vld [vmem:[%s5274_s3 + $0x88] ss:$16 sps:$4 sm:$0xff]   ;;  %v3560_v52 = vld [vmem:[%s5274_s3 + $0xac] ss:$16 sps:$4 sm:$0xff]  }
  0x1f   : > { %404 = vmatpush1.bf16.msra.mxu0 %v3516_v11  ;;  %889 = vmatpush1.bf16.msra.mxu1 %v3549_v23  ;;  %v3585_v53 = vld [vmem:[%s5274_s3 + $0x120] ss:$16 sps:$4 sm:$0xff]   ;;  %v3586_v54 = vld [vmem:[%s5274_s3 + $0x144] ss:$16 sps:$4 sm:$0xff]   ;;  %v3558_v55 = vld [vmem:[%s5274_s3 + $0xa8] ss:$16 sps:$4 sm:$0xff]  }
  0x20   : > { %405 = vmatprep.subr.bf16.mxu0 %v3517_v14  ;;  %890 = vmatprep.subr.bf16.mxu1 %v3550_v24  ;;  %v3566_v56 = vld [vmem:[%s5274_s3 + $0xcc] ss:$16 sps:$4 sm:$0xff]   ;;  %v3591_v57 = vld [vmem:[%s5274_s3 + $0x140] ss:$16 sps:$4 sm:$0xff]   ;;  %v3592_v58 = vld [vmem:[%s5274_s3 + $0x164] ss:$16 sps:$4 sm:$0xff]  }
  0x21   : > { %v3564_v59 = vld [vmem:[%s5274_s3 + $0xc8] ss:$16 sps:$4 sm:$0xff]   ;;  %v3572_v60 = vld [vmem:[%s5274_s3 + $0xec] ss:$16 sps:$4 sm:$0xff]   ;;  %v3597_v61 = vld [vmem:[%s5274_s3 + $0x160] ss:$16 sps:$4 sm:$0xff]  }
  0x22   : > { %v3598_v62 = vld [vmem:[%s5274_s3 + $0x184] ss:$16 sps:$4 sm:$0xff]   ;;  %v3570_v63 = vld [vmem:[%s5274_s3 + $0xe8] ss:$16 sps:$4 sm:$0xff]   ;;  %v3578_v0 = vld [vmem:[%s5274_s3 + $0x10c] ss:$16 sps:$4 sm:$0xff]  }
  0x23   : > { %406 = vmatpush1.bf16.msra.mxu0 %v3519_v17  ;;  %891 = vmatpush1.bf16.msra.mxu1 %v3555_v29  ;;  %v3603_v1 = vld [vmem:[%s5274_s3 + $0x180] ss:$16 sps:$4 sm:$0xff]   ;;  %v3584_v3 = vld [vmem:[%s5274_s3 + $0x12c] ss:$16 sps:$4 sm:$0xff]   ;;  %v3582_v4 = vld [vmem:[%s5274_s3 + $0x128] ss:$16 sps:$4 sm:$0xff]  }
  0x24   : > { %407 = vmatprep.subr.bf16.mxu0 %v3520_v18  ;;  %892 = vmatprep.subr.bf16.mxu1 %v3556_v30  ;;  %v3590_v5 = vld [vmem:[%s5274_s3 + $0x14c] ss:$16 sps:$4 sm:$0xff]   ;;  %v3588_v6 = vld [vmem:[%s5274_s3 + $0x148] ss:$16 sps:$4 sm:$0xff]   ;;  %v3604_v11 = vld [vmem:[%s5274_s3 + $0x1a4] ss:$16 sps:$4 sm:$0xff]  }
  0x25   : > { %v3596_v7 = vld [vmem:[%s5274_s3 + $0x16c] ss:$16 sps:$4 sm:$0xff]   ;;  %v3594_v8 = vld [vmem:[%s5274_s3 + $0x168] ss:$16 sps:$4 sm:$0xff]   ;;  %v3609_v14 = vld [vmem:[%s5274_s3 + $0x1a0] ss:$16 sps:$4 sm:$0xff]  }
  0x26   : > { %v3602_v9 = vld [vmem:[%s5274_s3 + $0x18c] ss:$16 sps:$4 sm:$0xff]   ;;  %v3600_v10 = vld [vmem:[%s5274_s3 + $0x188] ss:$16 sps:$4 sm:$0xff]   ;;  %v3610_v15 = vld [vmem:[%s5274_s3 + $0x1c4] ss:$16 sps:$4 sm:$0xff]  }
  0x27   : > { %408 = vmatpush1.bf16.msra.mxu0 %v3522_v21  ;;  %893 = vmatpush1.bf16.msra.mxu1 %v3561_v34  ;;  %v3608_v12 = vld [vmem:[%s5274_s3 + $0x1ac] ss:$16 sps:$4 sm:$0xff]   ;;  %v3606_v13 = vld [vmem:[%s5274_s3 + $0x1a8] ss:$16 sps:$4 sm:$0xff]   ;;  %v3615_v18 = vld [vmem:[%s5274_s3 + $0x1c0] ss:$16 sps:$4 sm:$0xff]  }
  0x28   : > { %409 = vmatprep.subr.bf16.mxu0 %v3523_v22  ;;  %894 = vmatprep.subr.bf16.mxu1 %v3562_v35  ;;  %v3614_v16 = vld [vmem:[%s5274_s3 + $0x1cc] ss:$16 sps:$4 sm:$0xff]   ;;  %v3612_v17 = vld [vmem:[%s5274_s3 + $0x1c8] ss:$16 sps:$4 sm:$0xff]   ;;  %v3616_v19 = vld [vmem:[%s5274_s3 + $0x1e4] ss:$16 sps:$4 sm:$0xff]  }
  0x29   : > { %v3620_v20 = vld [vmem:[%s5274_s3 + $0x1ec] ss:$16 sps:$4 sm:$0xff]   ;;  %v3618_v21 = vld [vmem:[%s5274_s3 + $0x1e8] ss:$16 sps:$4 sm:$0xff]   ;;  %v3621_v22 = vld [vmem:[%s5274_s3 + $0x1e0] ss:$16 sps:$4 sm:$0xff]  }
  0x2a   : > { %v3624_v23 = vld [vmem:[%s5276_s5 + $0x4] ss:$28 sps:$4 sm:$0xff]   ;;  %v3627_v24 = vld [vmem:[%s5276_s5 + $0xc] ss:$28 sps:$4 sm:$0xff]   ;;  %s5230_s28 = scalar_lea.sflag [#allocation3], %s270_s19  ;;  %s3998_s14 = scalar_lea.vmem %s5218_s21, 3584 }
  0x2b   : > { %410 = vmatpush1.bf16.msra.mxu0 %v3525_v25  ;;  %895 = vmatpush1.bf16.msra.mxu1 %v3567_v40  ;;  %v305_v25 = vlaneseq  ;;  %p3999_p11 = scmp.ne.s32.totalorder %s5218_s21, %s3998_s14  ;;  %s4063_s15 = smov [#allocation2]  }
  0x2c   : > { %935 = vmatprep.subr.bf16.mxu0 %v3530_v28  ;;  %896 = vmatprep.subr.bf16.mxu1 %v3568_v41  ;;  %v303_v28 = vld [vmem:[%s5273_s2] sm:$0x3]  ;;  %s4002_s16 = sshll.u32 %s4063_s15, 4  ;;  %s4003_s16 = int_to_ptr.vmem [resolvable:$false] %s4002_s16 }
  0x2d   : > { %v4406_v26 = vshrl.u32 %v305_v25, 7  ;;  %v3655_v25 = vld [vmem:[%s5276_s5 + $0x120] ss:$28 sps:$4 sm:$0xff]   ;;  %p4000_p12 = pnand %p3999_p11, %p4144_p5  ;;  %s4004_s8 = scalar_lea.vmem %s4003_s16, 7168 }
  0x2e   : > { %428 = vmatmul.mubr.bf16.vlgmr.msra.gmra.mrb[0].mxu0 %v285_v31  ;;  %p4005_p0 = scmp.lt.s32.totalorder %s5218_s21, %s4003_s16  ;;  %p4006_p1 = scmp.lt.s32.totalorder %s4004_s8, %s3998_s14 }
  0x2f   : > { %437 = vmatprep.mubr.bf16.mxu0 %v4062_v2  ;;  %936 = vmatpush1.bf16.msra.mxu0 %v3528_v32  ;;  %v3576_v2 = vld [vmem:[%s5274_s3 + $0x108] ss:$16 sps:$4 sm:$0xff]   ;;  %v4409_v27 = vsub.s32 0, %v4406_v26  ;;  %v4415_v29 = vsub.s32 1, %v4406_v26  ;;  %p4001_p13 = pneg %p4000_p12 }
  0x30   : > { %937 = vmatprep.subr.bf16.mxu0 %v3536_v33  ;;  %897 = vmatpush1.bf16.msra.mxu1 %v3573_v45  ;;  %p4007_p2 = por %p4006_p1, %p4005_p0 }
  0x31   : > { %898 = vmatprep.subr.bf16.mxu1 %v3574_v46  ;;  %v308_v30 = vrot.slane %v303_v28, %v4409_v27  ;;  %v312_v31 = vrot.slane %v303_v28, %v4415_v29  ;;  %v3660_v28 = vld [vmem:[%s5276_s5 + $0x154] ss:$28 sps:$4 sm:$0xff]  }
  0x32   : > { %p4008_p3 = pnand %p4007_p2, %p4001_p13 }
  0x33   : > { %938 = vmatpush1.bf16.msra.mxu0 %v3534_v38 }
  0x34   : > { %939 = vmatprep.subr.bf16.mxu0 %v3542_v39  ;;  %899 = vmatpush1.bf16.msra.mxu1 %v3579_v49 }
  0x35   : > { %900 = vmatprep.subr.bf16.mxu1 %v3580_v50 }
  0x36   : > { %438 = vmatmul.mubr.bf16.gmra.mrb[4].mxu0 %v286_v42 }
  0x37   : > { %940 = vmatpush1.bf16.msra.mxu0 %v3540_v43 }
  0x38   : > { %941 = vmatprep.subr.bf16.mxu0 %v3548_v44  ;;  %901 = vmatpush1.bf16.msra.mxu1 %v3585_v53  ;;  %v3622_v53 = vld [vmem:[%s5276_s5] ss:$28 sps:$4 sm:$0xff]  }
  0x39   : > { %902 = vmatprep.subr.bf16.mxu1 %v3586_v54  ;;  %v3625_v54 = vld [vmem:[%s5276_s5 + $0x8] ss:$28 sps:$4 sm:$0xff]  }
  0x3b   : > { %942 = vmatpush1.bf16.msra.mxu0 %v3546_v47 }
  0x3c   : > { %943 = vmatprep.subr.bf16.mxu0 %v3554_v48  ;;  %903 = vmatpush1.bf16.msra.mxu1 %v3591_v57  ;;  %v3630_v57 = vld [vmem:[%s5276_s5 + $0x3c] ss:$28 sps:$4 sm:$0xff]  }
  0x3d   : > { %904 = vmatprep.subr.bf16.mxu1 %v3592_v58  ;;  %v3633_v58 = vld [vmem:[%s5276_s5 + $0x44] ss:$28 sps:$4 sm:$0xff]  }
  0x3f   : > { %944 = vmatpush1.bf16.msra.mxu0 %v3552_v51 }
  0x40   : > { %945 = vmatprep.subr.bf16.mxu0 %v3560_v52  ;;  %905 = vmatpush1.bf16.msra.mxu1 %v3597_v61 }
  0x41   : > { %906 = vmatprep.subr.bf16.mxu1 %v3598_v62  ;;  %v3628_v62 = vld [vmem:[%s5276_s5 + $0x38] ss:$28 sps:$4 sm:$0xff]  }
  0x43   : > { %946 = vmatpush1.bf16.msra.mxu0 %v3558_v55 }
  0x44   : > { %947 = vmatprep.subr.bf16.mxu0 %v3566_v56  ;;  %907 = vmatpush1.bf16.msra.mxu1 %v3603_v1  ;;  %v3631_v1 = vld [vmem:[%s5276_s5 + $0x40] ss:$28 sps:$4 sm:$0xff]  }
  0x45   : > { %908 = vmatprep.subr.bf16.mxu1 %v3604_v11 }
  0x47   : > { %948 = vmatpush1.bf16.msra.mxu0 %v3564_v59 }
  0x48   : > { %949 = vmatprep.subr.bf16.mxu0 %v3572_v60  ;;  %909 = vmatpush1.bf16.msra.mxu1 %v3609_v14  ;;  %v3642_v14 = vld [vmem:[%s5276_s5 + $0xac] ss:$28 sps:$4 sm:$0xff]  }
  0x49   : > { %910 = vmatprep.subr.bf16.mxu1 %v3610_v15  ;;  %v3645_v15 = vld [vmem:[%s5276_s5 + $0xb4] ss:$28 sps:$4 sm:$0xff]  }
  0x4b   : > { %950 = vmatpush1.bf16.msra.mxu0 %v3570_v63 }
  0x4c   : > { %951 = vmatprep.subr.bf16.mxu0 %v3578_v0  ;;  %911 = vmatpush1.bf16.msra.mxu1 %v3615_v18  ;;  %v3648_v18 = vld [vmem:[%s5276_s5 + $0xe4] ss:$28 sps:$4 sm:$0xff]  }
  0x4d   : > { %912 = vmatprep.subr.bf16.mxu1 %v3616_v19  ;;  %v3651_v19 = vld [vmem:[%s5276_s5 + $0xec] ss:$28 sps:$4 sm:$0xff]  }
  0x4f   : > { %952 = vmatpush1.bf16.msra.mxu0 %v3576_v2 }
  0x50   : > { %953 = vmatprep.subr.bf16.mxu0 %v3584_v3  ;;  %913 = vmatpush1.bf16.msra.mxu1 %v3621_v22  ;;  %v3654_v22 = vld [vmem:[%s5276_s5 + $0x11c] ss:$28 sps:$4 sm:$0xff]  }
  0x51   : > { %2489 = vmatprep.subr.bf16.mxu1 %v3624_v23  ;;  %v3657_v23 = vld [vmem:[%s5276_s5 + $0x124] ss:$28 sps:$4 sm:$0xff]  }
  0x53   : > { %954 = vmatpush1.bf16.msra.mxu0 %v3582_v4  ;;  %v3636_v4 = vld [vmem:[%s5276_s5 + $0x74] ss:$28 sps:$4 sm:$0xff]  }
  0x54   : > { %955 = vmatprep.subr.bf16.mxu0 %v3590_v5 }
  0x57   : > { %956 = vmatpush1.bf16.msra.mxu0 %v3588_v6 }
  0x58   : > { %957 = vmatprep.subr.bf16.mxu0 %v3596_v7  ;;  %v3639_v7 = vld [vmem:[%s5276_s5 + $0x7c] ss:$28 sps:$4 sm:$0xff]  }
  0x5b   : > { %958 = vmatpush1.bf16.msra.mxu0 %v3594_v8 }
  0x5c   : > { %959 = vmatprep.subr.bf16.mxu0 %v3602_v9 }
  0x5f   : > { %960 = vmatpush1.bf16.msra.mxu0 %v3600_v10 }
  0x60   : > { %961 = vmatprep.subr.bf16.mxu0 %v3608_v12  ;;  %v3634_v12 = vld [vmem:[%s5276_s5 + $0x70] ss:$28 sps:$4 sm:$0xff]  }
  0x63   : > { %962 = vmatpush1.bf16.msra.mxu0 %v3606_v13  ;;  %v3637_v13 = vld [vmem:[%s5276_s5 + $0x78] ss:$28 sps:$4 sm:$0xff]  }
  0x64   : > { %963 = vmatprep.subr.bf16.mxu0 %v3614_v16  ;;  %v3640_v16 = vld [vmem:[%s5276_s5 + $0xa8] ss:$28 sps:$4 sm:$0xff]  }
  0x67   : > { %964 = vmatpush1.bf16.msra.mxu0 %v3612_v17  ;;  %v3643_v17 = vld [vmem:[%s5276_s5 + $0xb0] ss:$28 sps:$4 sm:$0xff]  }
  0x68   : > { %965 = vmatprep.subr.bf16.mxu0 %v3620_v20  ;;  %v3646_v20 = vld [vmem:[%s5276_s5 + $0xe0] ss:$28 sps:$4 sm:$0xff]  }
  0x6b   : > { %966 = vmatpush1.bf16.msra.mxu0 %v3618_v21  ;;  %v3649_v21 = vld [vmem:[%s5276_s5 + $0xe8] ss:$28 sps:$4 sm:$0xff]  }
  0x6c   : > { %2595 = vmatprep.subr.bf16.mxu0 %v3627_v24  ;;  %v3652_v24 = vld [vmem:[%s5276_s5 + $0x118] ss:$28 sps:$4 sm:$0xff]  }
 0x101   : > { %v429_v32 = vpop.f32.mrb[0].mxu0 }
 0x102   : > { %v430_v33 = vadd.f32 %v429_v32, %v308_v30  ;;  %v431_v34 = vpop.f32.mrb[1].mxu0  ;;  %v3661_v32 = vld [vmem:[%s5276_s5 + $0x158] ss:$28 sps:$4 sm:$0xff]  }
 0x103   : > { %v432_v35 = vadd.f32 %v431_v34, %v312_v31  ;;  %v433_v36 = vpop.f32.mrb[2].mxu0  ;;  %v3669_v34 = vld [vmem:[%s5276_s5 + $0x194] ss:$28 sps:$4 sm:$0xff]  }
 0x104   : > { %v456_v37 = vmul.f32 0.2, %v430_v33  ;;  %v434_v38 = vadd.f32 %v433_v36, %v308_v30  ;;  %v435_v39 = vpop.f32.mrb[3].mxu0  ;;  %vm448_vm0 = vcmp.gt.f32.partialorder %v430_v33, 0.0  ;;  %v3667_v36 = vld [vmem:[%s5276_s5 + $0x190] ss:$28 sps:$4 sm:$0xff]  }
 0x105   : > { %v457_v40 = vmul.f32 0.2, %v432_v35  ;;  %v436_v41 = vadd.f32 %v435_v39, %v312_v31  ;;  %vm449_vm2 = vcmp.gt.f32.partialorder %v432_v35, 0.0  ;;  %v3670_v39 = vld [vmem:[%s5276_s5 + $0x1c0] ss:$28 sps:$4 sm:$0xff]  }
 0x106   : > { %vm450_vm1 = vcmp.gt.f32.partialorder %v434_v38, 0.0  ;;  %v458_v42 = vmul.f32 0.2, %v434_v38  ;;  %v464_v44 = vsel %vm448_vm0, %v430_v33, %v456_v37  ;;  %v3666_v33 = vld [vmem:[%s5276_s5 + $0x18c] ss:$28 sps:$4 sm:$0xff]  }
 0x107   : > { %v459_v43 = vmul.f32 0.2, %v436_v41  ;;  %vm451_vm3 = vcmp.gt.f32.partialorder %v436_v41, 0.0  ;;  %v465_v47 = vsel %vm449_vm2, %v432_v35, %v457_v40  ;;  %v3664_v35 = vld [vmem:[%s5276_s5 + $0x188] ss:$28 sps:$4 sm:$0xff]  }
 0x108   : > { %v466_v45 = vsel %vm450_vm1, %v434_v38, %v458_v42  ;;  %v3672_v37 = vld [vmem:[%s5276_s5 + $0x1c4] ss:$28 sps:$4 sm:$0xff]   ;;  %v3675_v38 = vld [vmem:[%s5276_s5 + $0x1cc] ss:$28 sps:$4 sm:$0xff]  }
 0x109   : > { %v439_v46 = vpop.f32.mrb[4].mxu0  ;;  %v467_v48 = vsel %vm451_vm3, %v436_v41, %v459_v43  ;;  %v472_v49 = vpack.c.bf16 %v466_v45, %v464_v44  ;;  %v3673_v40 = vld [vmem:[%s5276_s5 + $0x1c8] ss:$28 sps:$4 sm:$0xff]   ;;  %v3678_v41 = vld [vmem:[%s5276_s5 + $0x1fc] ss:$28 sps:$4 sm:$0xff]  }
 0x10a   : > { %v440_v50 = vadd.f32 %v439_v46, %v308_v30  ;;  %v441_v51 = vpop.f32.mrb[5].mxu0  ;;  %v473_v52 = vpack.c.bf16 %v467_v48, %v465_v47  ;;  %v3681_v42 = vld [vmem:[%s5276_s5 + $0x204] ss:$28 sps:$4 sm:$0xff]   ;;  %v3676_v43 = vld [vmem:[%s5276_s5 + $0x1f8] ss:$28 sps:$4 sm:$0xff]  }
 0x10b   : > { %v442_v55 = vadd.f32 %v441_v51, %v312_v31  ;;  %v443_v56 = vpop.f32.mrb[6].mxu0  ;;  %v3679_v44 = vld [vmem:[%s5276_s5 + $0x200] ss:$28 sps:$4 sm:$0xff]   ;;  %v3684_v45 = vld [vmem:[%s5276_s5 + $0x234] ss:$28 sps:$4 sm:$0xff]  }
 0x10c   : > { %vm452_vm4 = vcmp.gt.f32.partialorder %v440_v50, 0.0  ;;  %v460_v59 = vmul.f32 0.2, %v440_v50  ;;  %v444_v60 = vadd.f32 %v443_v56, %v308_v30  ;;  %v445_v61 = vpop.f32.mrb[7].mxu0  ;;  %914 = vmatprep.mubr.bf16.mxu1 %v473_v52  ;;  %967 = vmatprep.mubr.bf16.mxu0 %v473_v52  ;;  %v3663_v30 = vld [vmem:[%s5276_s5 + $0x15c] ss:$28 sps:$4 sm:$0xff]  }
 0x10d   : > { %vm453_vm5 = vcmp.gt.f32.partialorder %v442_v55, 0.0  ;;  %v461_v63 = vmul.f32 0.2, %v442_v55  ;;  %v446_v0 = vadd.f32 %v445_v61, %v312_v31  ;;  %915 = vmatmul.mubr.bf16.vlgmr.msra.gmra.mrb[0].mxu1 %v472_v49  ;;  %968 = vmatmul.mubr.bf16.vlgmr.msra.gmra.mrb[8].mxu0 %v472_v49  ;;  %v3658_v31 = vld [vmem:[%s5276_s5 + $0x150] ss:$28 sps:$4 sm:$0xff]  }
 0x10e   : > { %vm454_vm6 = vcmp.gt.f32.partialorder %v444_v60, 0.0  ;;  %v462_v2 = vmul.f32 0.2, %v444_v60  ;;  %v468_v3 = vsel %vm452_vm4, %v440_v50, %v460_v59  ;;  %2490 = vmatpush1.bf16.msra.mxu1 %v3622_v53  ;;  %2596 = vmatpush1.bf16.msra.mxu0 %v3625_v54  ;;  %v3687_v46 = vld [vmem:[%s5276_s5 + $0x23c] ss:$28 sps:$4 sm:$0xff]  }
 0x10f   : > { %vm455_vm7 = vcmp.gt.f32.partialorder %v446_v0, 0.0  ;;  %v463_v5 = vmul.f32 0.2, %v446_v0  ;;  %v469_v6 = vsel %vm453_vm5, %v442_v55, %v461_v63  ;;  %2491 = vmatprep.subr.bf16.mxu1 %v3630_v57  ;;  %2597 = vmatprep.subr.bf16.mxu0 %v3633_v58  ;;  %v3682_v47 = vld [vmem:[%s5276_s5 + $0x230] ss:$28 sps:$4 sm:$0xff]  }
 0x110   : > { %v470_v8 = vsel %vm454_vm6, %v444_v60, %v462_v2  ;;  %v3685_v48 = vld [vmem:[%s5276_s5 + $0x238] ss:$28 sps:$4 sm:$0xff]   ;;  %v3690_v49 = vld [vmem:[%s5276_s5 + $0x26c] ss:$28 sps:$4 sm:$0xff]   ;;  %v3696_v53 = vld [vmem:[%s5276_s5 + $0x2a4] ss:$28 sps:$4 sm:$0xff]  }
 0x111   : > { %v471_v9 = vsel %vm455_vm7, %v446_v0, %v463_v5  ;;  %v474_v10 = vpack.c.bf16 %v470_v8, %v468_v3  ;;  %v3693_v50 = vld [vmem:[%s5276_s5 + $0x274] ss:$28 sps:$4 sm:$0xff]   ;;  %v3688_v51 = vld [vmem:[%s5276_s5 + $0x268] ss:$28 sps:$4 sm:$0xff]   ;;  %v3694_v55 = vld [vmem:[%s5276_s5 + $0x2a0] ss:$28 sps:$4 sm:$0xff]  }
 0x112   : > { %v475_v11 = vpack.c.bf16 %v471_v9, %v469_v6  ;;  %2492 = vmatpush1.bf16.msra.mxu1 %v3628_v62  ;;  %2598 = vmatpush1.bf16.msra.mxu0 %v3631_v1  ;;  %v3691_v52 = vld [vmem:[%s5276_s5 + $0x270] ss:$28 sps:$4 sm:$0xff]   ;;  %v3697_v56 = vld [vmem:[%s5276_s5 + $0x2a8] ss:$28 sps:$4 sm:$0xff]   ;;  %v3702_v57 = vld [vmem:[%s5276_s5 + $0x2dc] ss:$28 sps:$4 sm:$0xff]  }
 0x113   : > { %2493 = vmatprep.subr.bf16.mxu1 %v3636_v4  ;;  %2599 = vmatprep.subr.bf16.mxu0 %v3639_v7  ;;  %v3699_v54 = vld [vmem:[%s5276_s5 + $0x2ac] ss:$28 sps:$4 sm:$0xff]   ;;  %v3705_v58 = vld [vmem:[%s5276_s5 + $0x2e4] ss:$28 sps:$4 sm:$0xff]   ;;  %v3700_v59 = vld [vmem:[%s5276_s5 + $0x2d8] ss:$28 sps:$4 sm:$0xff]  }
 0x114   : > { %924 = vmatprep.mubr.bf16.mxu1 %v475_v11  ;;  %977 = vmatprep.mubr.bf16.mxu0 %v475_v11  ;;  %v3703_v60 = vld [vmem:[%s5276_s5 + $0x2e0] ss:$28 sps:$4 sm:$0xff]   ;;  %v3708_v61 = vld [vmem:[%s5276_s5 + $0x314] ss:$28 sps:$4 sm:$0xff]   ;;  %v3714_v1 = vld [vmem:[%s5276_s5 + $0x34c] ss:$28 sps:$4 sm:$0xff]  }
 0x115   : > { %925 = vmatmul.mubr.bf16.gmra.mrb[4].mxu1 %v474_v10  ;;  %978 = vmatmul.mubr.bf16.gmra.mrb[12].mxu0 %v474_v10  ;;  %v3711_v62 = vld [vmem:[%s5276_s5 + $0x31c] ss:$28 sps:$4 sm:$0xff]   ;;  %v3706_v63 = vld [vmem:[%s5276_s5 + $0x310] ss:$28 sps:$4 sm:$0xff]   ;;  %v3712_v3 = vld [vmem:[%s5276_s5 + $0x348] ss:$28 sps:$4 sm:$0xff]  }
 0x116   : > { %2494 = vmatpush1.bf16.msra.mxu1 %v3634_v12  ;;  %2600 = vmatpush1.bf16.msra.mxu0 %v3637_v13  ;;  %v3709_v0 = vld [vmem:[%s5276_s5 + $0x318] ss:$28 sps:$4 sm:$0xff]   ;;  %v3715_v4 = vld [vmem:[%s5276_s5 + $0x350] ss:$28 sps:$4 sm:$0xff]   ;;  %v3720_v5 = vld [vmem:[%s5276_s5 + $0x384] ss:$28 sps:$4 sm:$0xff]  }
 0x117   : > { %2495 = vmatprep.subr.bf16.mxu1 %v3642_v14  ;;  %2601 = vmatprep.subr.bf16.mxu0 %v3645_v15  ;;  %v3717_v2 = vld [vmem:[%s5276_s5 + $0x354] ss:$28 sps:$4 sm:$0xff]   ;;  %v3723_v6 = vld [vmem:[%s5276_s5 + $0x38c] ss:$28 sps:$4 sm:$0xff]   ;;  %v552_v7 = vsub.s32 2, %v4406_v26  ;;  %v556_v9 = vsub.s32 3, %v4406_v26 }
 0x118   : > { %v540_v8 = vld [vmem:[%s5275_s4] sm:$0xf] }
 0x119   : > { %v545_v10 = vrot.slane %v540_v8, %v4409_v27  ;;  %v4619_v11 = vrot.slane %v540_v8, %v552_v7  ;;  %v4622_v12 = vrot.slane %v540_v8, %v4415_v29  ;;  %v4626_v13 = vrot.slane %v540_v8, %v556_v9 }
 0x11a   : > { %2496 = vmatpush1.bf16.msra.mxu1 %v3640_v16  ;;  %2602 = vmatpush1.bf16.msra.mxu0 %v3643_v17 }
 0x11b   : > { %2497 = vmatprep.subr.bf16.mxu1 %v3648_v18  ;;  %2603 = vmatprep.subr.bf16.mxu0 %v3651_v19 }
 0x11e   : > { %2498 = vmatpush1.bf16.msra.mxu1 %v3646_v20  ;;  %2604 = vmatpush1.bf16.msra.mxu0 %v3649_v21 }
 0x11f   : > { %2499 = vmatprep.subr.bf16.mxu1 %v3654_v22  ;;  %2605 = vmatprep.subr.bf16.mxu0 %v3657_v23 }
 0x122   : > { %2500 = vmatpush1.bf16.msra.mxu1 %v3652_v24  ;;  %2606 = vmatpush1.bf16.msra.mxu0 %v3655_v25 }
 0x123   : > { %2501 = vmatprep.subr.bf16.mxu1 %v3660_v28  ;;  %2607 = vmatprep.subr.bf16.mxu0 %v3663_v30 }
 0x126   : > { %2502 = vmatpush1.bf16.msra.mxu1 %v3658_v31  ;;  %2608 = vmatpush1.bf16.msra.mxu0 %v3661_v32 }
 0x127   : > { %2503 = vmatprep.subr.bf16.mxu1 %v3666_v33  ;;  %2609 = vmatprep.subr.bf16.mxu0 %v3669_v34 }
 0x12a   : > { %2504 = vmatpush1.bf16.msra.mxu1 %v3664_v35  ;;  %2610 = vmatpush1.bf16.msra.mxu0 %v3667_v36 }
 0x12b   : > { %2505 = vmatprep.subr.bf16.mxu1 %v3672_v37  ;;  %2611 = vmatprep.subr.bf16.mxu0 %v3675_v38 }
 0x12e   : > { %2506 = vmatpush1.bf16.msra.mxu1 %v3670_v39  ;;  %2612 = vmatpush1.bf16.msra.mxu0 %v3673_v40 }
 0x12f   : > { %2507 = vmatprep.subr.bf16.mxu1 %v3678_v41  ;;  %2613 = vmatprep.subr.bf16.mxu0 %v3681_v42 }
 0x132   : > { %2508 = vmatpush1.bf16.msra.mxu1 %v3676_v43  ;;  %2614 = vmatpush1.bf16.msra.mxu0 %v3679_v44 }
 0x133   : > { %2509 = vmatprep.subr.bf16.mxu1 %v3684_v45  ;;  %2615 = vmatprep.subr.bf16.mxu0 %v3687_v46 }
 0x136   : > { %2510 = vmatpush1.bf16.msra.mxu1 %v3682_v47  ;;  %2616 = vmatpush1.bf16.msra.mxu0 %v3685_v48 }
 0x137   : > { %2511 = vmatprep.subr.bf16.mxu1 %v3690_v49  ;;  %2617 = vmatprep.subr.bf16.mxu0 %v3693_v50 }
 0x13a   : > { %2512 = vmatpush1.bf16.msra.mxu1 %v3688_v51  ;;  %2618 = vmatpush1.bf16.msra.mxu0 %v3691_v52 }
 0x13b   : > { %2513 = vmatprep.subr.bf16.mxu1 %v3696_v53  ;;  %2619 = vmatprep.subr.bf16.mxu0 %v3699_v54 }
 0x13e   : > { %2514 = vmatpush1.bf16.msra.mxu1 %v3694_v55  ;;  %2620 = vmatpush1.bf16.msra.mxu0 %v3697_v56 }
 0x13f   : > { %2515 = vmatprep.subr.bf16.mxu1 %v3702_v57  ;;  %2621 = vmatprep.subr.bf16.mxu0 %v3705_v58 }
 0x142   : > { %2516 = vmatpush1.bf16.msra.mxu1 %v3700_v59  ;;  %2622 = vmatpush1.bf16.msra.mxu0 %v3703_v60  ;;  %v3718_v60 = vld [vmem:[%s5276_s5 + $0x380] ss:$28 sps:$4 sm:$0xff]  }
 0x143   : > { %2517 = vmatprep.subr.bf16.mxu1 %v3708_v61  ;;  %2623 = vmatprep.subr.bf16.mxu0 %v3711_v62  ;;  %v3721_v61 = vld [vmem:[%s5276_s5 + $0x388] ss:$28 sps:$4 sm:$0xff]  }
 0x146   : > { %2518 = vmatpush1.bf16.msra.mxu1 %v3706_v63  ;;  %2624 = vmatpush1.bf16.msra.mxu0 %v3709_v0 }
 0x147   : > { %2519 = vmatprep.subr.bf16.mxu1 %v3714_v1  ;;  %2625 = vmatprep.subr.bf16.mxu0 %v3717_v2  ;;  %v3726_v1 = vld [vmem:[%s5276_s5 + $0x3bc] ss:$28 sps:$4 sm:$0xff]   ;;  %v3729_v2 = vld [vmem:[%s5276_s5 + $0x3c4] ss:$28 sps:$4 sm:$0xff]  }
 0x14a   : > { %2520 = vmatpush1.bf16.msra.mxu1 %v3712_v3  ;;  %2626 = vmatpush1.bf16.msra.mxu0 %v3715_v4 }
 0x14b   : > { %2542 = vmatprep.subr.bf16.mxu1 %v3720_v5  ;;  %2648 = vmatprep.subr.bf16.mxu0 %v3723_v6 }
 0x1e0   : > { %v916_v14 = vpop.f32.mrb[0].mxu1  ;;  %v969_v15 = vpop.f32.mrb[8].mxu0 }
 0x1e1   : > { %v917_v16 = vadd.f32 %v916_v14, %v545_v10  ;;  %v970_v17 = vadd.f32 %v969_v15, %v4619_v11  ;;  %v918_v18 = vpop.f32.mrb[1].mxu1  ;;  %v971_v19 = vpop.f32.mrb[9].mxu0  ;;  %v3724_v14 = vld [vmem:[%s5276_s5 + $0x3b8] ss:$28 sps:$4 sm:$0xff]   ;;  %v3727_v15 = vld [vmem:[%s5276_s5 + $0x3c0] ss:$28 sps:$4 sm:$0xff]  }
 0x1e2   : > { %v919_v20 = vadd.f32 %v918_v18, %v4622_v12  ;;  %v972_v21 = vadd.f32 %v971_v19, %v4626_v13  ;;  %v920_v22 = vpop.f32.mrb[2].mxu1  ;;  %v973_v23 = vpop.f32.mrb[10].mxu0 }
 0x1e3   : > { %vm988_vm8 = vcmp.gt.f32.partialorder %v917_v16, 0.0  ;;  %v1004_v24 = vmul.f32 0.2, %v917_v16  ;;  %vm990_vm9 = vcmp.gt.f32.partialorder %v970_v17, 0.0  ;;  %v1006_v25 = vmul.f32 0.2, %v970_v17 }
 0x1e4   : > { %vm989_vm10 = vcmp.gt.f32.partialorder %v919_v20, 0.0  ;;  %v1005_v28 = vmul.f32 0.2, %v919_v20  ;;  %vm991_vm11 = vcmp.gt.f32.partialorder %v972_v21, 0.0  ;;  %v1007_v30 = vmul.f32 0.2, %v972_v21 }
 0x1e5   : > { %v921_v31 = vadd.f32 %v920_v22, %v545_v10  ;;  %v974_v32 = vadd.f32 %v973_v23, %v4619_v11  ;;  %v922_v33 = vpop.f32.mrb[3].mxu1  ;;  %v975_v34 = vpop.f32.mrb[11].mxu0  ;;  %v1020_v35 = vsel %vm988_vm8, %v917_v16, %v1004_v24  ;;  %v1022_v36 = vsel %vm990_vm9, %v970_v17, %v1006_v25  ;;  %v3732_v17 = vld [vmem:[%s5276_s5 + $0x3f4] ss:$28 sps:$4 sm:$0xff]  }
 0x1e6   : > { %v923_v37 = vadd.f32 %v922_v33, %v4622_v12  ;;  %v976_v38 = vadd.f32 %v975_v34, %v4626_v13  ;;  %v1021_v43 = vsel %vm989_vm10, %v919_v20, %v1005_v28  ;;  %v1023_v44 = vsel %vm991_vm11, %v972_v21, %v1007_v30  ;;  %v3735_v20 = vld [vmem:[%s5276_s5 + $0x3fc] ss:$28 sps:$4 sm:$0xff]   ;;  %v3730_v33 = vld [vmem:[%s5276_s5 + $0x3f0] ss:$28 sps:$4 sm:$0xff]  }
 0x1e7   : > { %vm992_vm12 = vcmp.gt.f32.partialorder %v921_v31, 0.0  ;;  %v1008_v39 = vmul.f32 0.2, %v921_v31  ;;  %vm994_vm13 = vcmp.gt.f32.partialorder %v974_v32, 0.0  ;;  %v1010_v40 = vmul.f32 0.2, %v974_v32 }
 0x1e8   : > { %vm993_vm14 = vcmp.gt.f32.partialorder %v923_v37, 0.0  ;;  %v1009_v41 = vmul.f32 0.2, %v923_v37  ;;  %vm995_vm15 = vcmp.gt.f32.partialorder %v976_v38, 0.0  ;;  %v1011_v42 = vmul.f32 0.2, %v976_v38 }
 0x1e9   : > { %v1024_v45 = vsel %vm992_vm12, %v921_v31, %v1008_v39  ;;  %v1026_v46 = vsel %vm994_vm13, %v974_v32, %v1010_v40  ;;  %v926_v47 = vpop.f32.mrb[4].mxu1  ;;  %v979_v48 = vpop.f32.mrb[12].mxu0  ;;  %v3733_v34 = vld [vmem:[%s5276_s5 + $0x3f8] ss:$28 sps:$4 sm:$0xff]   ;;  %vm2939_vm8 = vcmask 130048  }
 0x1ea   : > { %v4636_v49 = vpack.c.bf16 %v1024_v45, %v1020_v35  ;;  %v4638_v50 = vpack.c.bf16 %v1026_v46, %v1022_v36  ;;  %v1025_v51 = vsel %vm993_vm14, %v923_v37, %v1009_v41  ;;  %v1027_v52 = vsel %vm995_vm15, %v976_v38, %v1011_v42  ;;  %v928_v53 = vpop.f32.mrb[5].mxu1  ;;  %v981_v54 = vpop.f32.mrb[13].mxu0  ;;  %v3738_v38 = vld [vmem:[%s5276_s5 + $0x42c] ss:$28 sps:$4 sm:$0xff]   ;;  %v3741_v39 = vld [vmem:[%s5276_s5 + $0x434] ss:$28 sps:$4 sm:$0xff]  }
 0x1eb   : > { %v4640_v55 = vpack.c.bf16 %v1025_v51, %v1021_v43  ;;  %v4642_v56 = vpack.c.bf16 %v1027_v52, %v1023_v44  ;;  %v927_v57 = vadd.f32 %v926_v47, %v545_v10  ;;  %v929_v58 = vadd.f32 %v928_v53, %v4622_v12  ;;  %v930_v59 = vpop.f32.mrb[6].mxu1  ;;  %v983_v62 = vpop.f32.mrb[14].mxu0  ;;  %v3736_v41 = vld [vmem:[%s5276_s5 + $0x428] ss:$28 sps:$4 sm:$0xff]   ;;  %v3739_v42 = vld [vmem:[%s5276_s5 + $0x430] ss:$28 sps:$4 sm:$0xff]  }
 0x1ec   : > { %v931_v63 = vadd.f32 %v930_v59, %v545_v10  ;;  %v932_v0 = vpop.f32.mrb[7].mxu1  ;;  %v980_v3 = vadd.f32 %v979_v48, %v4619_v11  ;;  %v982_v4 = vadd.f32 %v981_v54, %v4626_v13  ;;  %v984_v5 = vadd.f32 %v983_v62, %v4619_v11  ;;  %v985_v6 = vpop.f32.mrb[15].mxu0  ;;  %v3744_v44 = vld [vmem:[%s5276_s5 + $0x464] ss:$28 sps:$4 sm:$0xff]   ;;  %v3747_v45 = vld [vmem:[%s5276_s5 + $0x46c] ss:$28 sps:$4 sm:$0xff]  }
 0x1ed   : > { %vm996_vm0 = vcmp.gt.f32.partialorder %v927_v57, 0.0  ;;  %v1012_v8 = vmul.f32 0.2, %v927_v57  ;;  %vm997_vm1 = vcmp.gt.f32.partialorder %v929_v58, 0.0  ;;  %v1013_v10 = vmul.f32 0.2, %v929_v58  ;;  %2521 = vmatprep.mubr.bf16.mxu1 %v4640_v55  ;;  %2627 = vmatprep.mubr.bf16.mxu0 %v4640_v55 }
 0x1ee   : > { %vm1000_vm2 = vcmp.gt.f32.partialorder %v931_v63, 0.0  ;;  %v1016_v16 = vmul.f32 0.2, %v931_v63  ;;  %v933_v11 = vadd.f32 %v932_v0, %v4622_v12  ;;  %2522 = vmatmul.mubr.bf16.vlgmr.msra.gmra.mrb[8].mxu1 %v4636_v49  ;;  %2628 = vmatmul.mubr.bf16.vlgmr.msra.gmra.mrb[16].mxu0 %v4636_v49  ;;  %vm998_vm3 = vcmp.gt.f32.partialorder %v980_v3, 0.0  ;;  %v3742_v46 = vld [vmem:[%s5276_s5 + $0x460] ss:$28 sps:$4 sm:$0xff]  }
 0x1ef   : > { %v1028_v18 = vsel %vm996_vm0, %v927_v57, %v1012_v8  ;;  %v1029_v19 = vsel %vm997_vm1, %v929_v58, %v1013_v10  ;;  %2543 = vmatpush1.bf16.msra.mxu1 %v3718_v60  ;;  %2649 = vmatpush1.bf16.msra.mxu0 %v3721_v61  ;;  %v1014_v21 = vmul.f32 0.2, %v980_v3  ;;  %vm999_vm4 = vcmp.gt.f32.partialorder %v982_v4, 0.0  ;;  %v3745_v47 = vld [vmem:[%s5276_s5 + $0x468] ss:$28 sps:$4 sm:$0xff]  }
 0x1f0   : > { %v1032_v12 = vsel %vm1000_vm2, %v931_v63, %v1016_v16  ;;  %vm1001_vm5 = vcmp.gt.f32.partialorder %v933_v11, 0.0  ;;  %v1017_v22 = vmul.f32 0.2, %v933_v11  ;;  %2544 = vmatprep.subr.bf16.mxu1 %v3726_v1  ;;  %2650 = vmatprep.subr.bf16.mxu0 %v3729_v2  ;;  %v1015_v23 = vmul.f32 0.2, %v982_v4 }
 0x1f1   : > { %v4677_v24 = vpack.c.bf16 %v1032_v12, %v1028_v18  ;;  %v1030_v25 = vsel %vm998_vm3, %v980_v3, %v1014_v21  ;;  %vm1002_vm6 = vcmp.gt.f32.partialorder %v984_v5, 0.0  ;;  %v1018_v28 = vmul.f32 0.2, %v984_v5  ;;  %v3750_v48 = vld [vmem:[%s5276_s5 + $0x49c] ss:$28 sps:$4 sm:$0xff]  }
 0x1f2   : > { %v1033_v30 = vsel %vm1001_vm5, %v933_v11, %v1017_v22  ;;  %v986_v31 = vadd.f32 %v985_v6, %v4626_v13  ;;  %v1031_v36 = vsel %vm999_vm4, %v982_v4, %v1015_v23  ;;  %v3753_v51 = vld [vmem:[%s5276_s5 + $0x4a4] ss:$28 sps:$4 sm:$0xff]   ;;  %v3748_v52 = vld [vmem:[%s5276_s5 + $0x498] ss:$28 sps:$4 sm:$0xff]   ;;  %v3754_v58 = vld [vmem:[%s5276_s5 + $0x4d0] ss:$28 sps:$4 sm:$0xff]  }
 0x1f3   : > { %v4680_v32 = vpack.c.bf16 %v1033_v30, %v1029_v19  ;;  %2545 = vmatpush1.bf16.msra.mxu1 %v3724_v14  ;;  %2651 = vmatpush1.bf16.msra.mxu0 %v3727_v15  ;;  %v1034_v35 = vsel %vm1002_vm6, %v984_v5, %v1018_v28  ;;  %v3751_v53 = vld [vmem:[%s5276_s5 + $0x4a0] ss:$28 sps:$4 sm:$0xff]   ;;  %v3756_v54 = vld [vmem:[%s5276_s5 + $0x4d4] ss:$28 sps:$4 sm:$0xff]   ;;  %v3762_v60 = vld [vmem:[%s5276_s5 + $0x50c] ss:$28 sps:$4 sm:$0xff]  }
 0x1f4   : > { %2546 = vmatprep.subr.bf16.mxu1 %v3732_v17  ;;  %2652 = vmatprep.subr.bf16.mxu0 %v3735_v20  ;;  %v4689_v37 = vpack.c.bf16 %v1034_v35, %v1030_v25  ;;  %vm1003_vm7 = vcmp.gt.f32.partialorder %v986_v31, 0.0  ;;  %v1019_v13 = vmul.f32 0.2, %v986_v31  ;;  %v3759_v57 = vld [vmem:[%s5276_s5 + $0x4dc] ss:$28 sps:$4 sm:$0xff]  }
 0x1f5   : > { %2531 = vmatprep.mubr.bf16.mxu1 %v4680_v32  ;;  %2637 = vmatprep.mubr.bf16.mxu0 %v4680_v32  ;;  %v3757_v59 = vld [vmem:[%s5276_s5 + $0x4d8] ss:$28 sps:$4 sm:$0xff]   ;;  %v3760_v62 = vld [vmem:[%s5276_s5 + $0x508] ss:$28 sps:$4 sm:$0xff]   ;;  %v3763_v63 = vld [vmem:[%s5276_s5 + $0x510] ss:$28 sps:$4 sm:$0xff]  }
 0x1f6   : > { %2532 = vmatmul.mubr.bf16.gmra.mrb[12].mxu1 %v4677_v24  ;;  %2638 = vmatmul.mubr.bf16.gmra.mrb[20].mxu0 %v4677_v24  ;;  %v1035_v40 = vsel %vm1003_vm7, %v986_v31, %v1019_v13  ;;  %v3765_v61 = vld [vmem:[%s5276_s5 + $0x514] ss:$28 sps:$4 sm:$0xff]   ;;  %v3768_v0 = vld [vmem:[%s5276_s5 + $0x544] ss:$28 sps:$4 sm:$0xff]   ;;  %v3771_v1 = vld [vmem:[%s5276_s5 + $0x54c] ss:$28 sps:$4 sm:$0xff]  }
 0x1f7   : > { %2547 = vmatpush1.bf16.msra.mxu1 %v3730_v33  ;;  %2653 = vmatpush1.bf16.msra.mxu0 %v3733_v34  ;;  %v4707_v43 = vpack.c.bf16 %v1035_v40, %v1031_v36  ;;  %v3766_v2 = vld [vmem:[%s5276_s5 + $0x540] ss:$28 sps:$4 sm:$0xff]   ;;  %v3769_v3 = vld [vmem:[%s5276_s5 + $0x548] ss:$28 sps:$4 sm:$0xff]   ;;  %v3772_v6 = vld [vmem:[%s5276_s5 + $0x578] ss:$28 sps:$4 sm:$0xff]  }
 0x1f8   : > { %2574 = vmatprep.mubr.bf16.mxu1 %v4642_v56  ;;  %2680 = vmatprep.mubr.bf16.mxu0 %v4642_v56  ;;  %v3774_v4 = vld [vmem:[%s5276_s5 + $0x57c] ss:$28 sps:$4 sm:$0xff]   ;;  %v3777_v5 = vld [vmem:[%s5276_s5 + $0x584] ss:$28 sps:$4 sm:$0xff]   ;;  %v3780_v10 = vld [vmem:[%s5276_s5 + $0x5b4] ss:$28 sps:$4 sm:$0xff]  }
 0x1f9   : > { %2548 = vmatprep.subr.bf16.mxu1 %v3738_v38  ;;  %2654 = vmatprep.subr.bf16.mxu0 %v3741_v39  ;;  %v3775_v8 = vld [vmem:[%s5276_s5 + $0x580] ss:$28 sps:$4 sm:$0xff]   ;;  %v3778_v15 = vld [vmem:[%s5276_s5 + $0x5b0] ss:$28 sps:$4 sm:$0xff]   ;;  %v3781_v16 = vld [vmem:[%s5276_s5 + $0x5b8] ss:$28 sps:$4 sm:$0xff]  }
 0x1fa   : > { %v3783_v14 = vld [vmem:[%s5276_s5 + $0x5bc] ss:$28 sps:$4 sm:$0xff]   ;;  %v3786_v11 = vld [vmem:[%s5276_s5 + $0x5ec] ss:$28 sps:$4 sm:$0xff]   ;;  %v3789_v17 = vld [vmem:[%s5276_s5 + $0x5f4] ss:$28 sps:$4 sm:$0xff]  }
 0x1fb   : > { %2549 = vmatpush1.bf16.msra.mxu1 %v3736_v41  ;;  %2655 = vmatpush1.bf16.msra.mxu0 %v3739_v42  ;;  %v3784_v18 = vld [vmem:[%s5276_s5 + $0x5e8] ss:$28 sps:$4 sm:$0xff]   ;;  %v3787_v19 = vld [vmem:[%s5276_s5 + $0x5f0] ss:$28 sps:$4 sm:$0xff]   ;;  %v3790_v12 = vld [vmem:[%s5276_s5 + $0x620] ss:$28 sps:$4 sm:$0xff]  }
 0x1fc   : > { %2550 = vmatprep.subr.bf16.mxu1 %v3744_v44  ;;  %2656 = vmatprep.subr.bf16.mxu0 %v3747_v45  ;;  %v3792_v20 = vld [vmem:[%s5276_s5 + $0x624] ss:$28 sps:$4 sm:$0xff]   ;;  %v3795_v21 = vld [vmem:[%s5276_s5 + $0x62c] ss:$28 sps:$4 sm:$0xff]   ;;  %v3798_v23 = vld [vmem:[%s5276_s5 + $0x65c] ss:$28 sps:$4 sm:$0xff]  }
 0x1fd   : > { %v3793_v22 = vld [vmem:[%s5276_s5 + $0x628] ss:$28 sps:$4 sm:$0xff]   ;;  %v3796_v28 = vld [vmem:[%s5276_s5 + $0x658] ss:$28 sps:$4 sm:$0xff]   ;;  %v3799_v30 = vld [vmem:[%s5276_s5 + $0x660] ss:$28 sps:$4 sm:$0xff]  }
 0x1fe   : > { %v3801_v25 = vld [vmem:[%s5276_s5 + $0x664] ss:$28 sps:$4 sm:$0xff]   ;;  %v3804_v31 = vld [vmem:[%s5276_s5 + $0x694] ss:$28 sps:$4 sm:$0xff]   ;;  %v3807_v33 = vld [vmem:[%s5276_s5 + $0x69c] ss:$28 sps:$4 sm:$0xff]  }
 0x1ff   : > { %2551 = vmatpush1.bf16.msra.mxu1 %v3742_v46  ;;  %2657 = vmatpush1.bf16.msra.mxu0 %v3745_v47  ;;  %v3802_v34 = vld [vmem:[%s5276_s5 + $0x690] ss:$28 sps:$4 sm:$0xff]   ;;  %v3805_v35 = vld [vmem:[%s5276_s5 + $0x698] ss:$28 sps:$4 sm:$0xff]   ;;  %v3808_v38 = vld [vmem:[%s5276_s5 + $0x6c8] ss:$28 sps:$4 sm:$0xff]  }
 0x200   : > { %2552 = vmatprep.subr.bf16.mxu1 %v3750_v48  ;;  %2658 = vmatprep.subr.bf16.mxu0 %v3753_v51  ;;  %v3810_v36 = vld [vmem:[%s5276_s5 + $0x6cc] ss:$28 sps:$4 sm:$0xff]   ;;  %v3813_v13 = vld [vmem:[%s5276_s5 + $0x6d4] ss:$28 sps:$4 sm:$0xff]   ;;  %v3826_v51 = vld [vmem:[%s5276_s5 + $0x84] ss:$28 sps:$4 sm:$0xff]  }
 0x201   : > { %v3811_v39 = vld [vmem:[%s5276_s5 + $0x6d0] ss:$28 sps:$4 sm:$0xff]   ;;  %v3817_v41 = vld [vmem:[%s5276_s5 + $0x1d8] ss:$28 sps:$4 sm:$0xff]   ;;  %v3819_v47 = vld [vmem:[%s5276_s5 + $0x48] ss:$28 sps:$4 sm:$0xff]  }
 0x202   : > { %v3816_v40 = vld [vmem:[%s5276_s5 + $0x14] ss:$28 sps:$4 sm:$0xff]   ;;  %v3821_v45 = vld [vmem:[%s5276_s5 + $0x4c] ss:$28 sps:$4 sm:$0xff]  }
 0x203   : > { %2553 = vmatpush1.bf16.msra.mxu1 %v3748_v52  ;;  %2659 = vmatpush1.bf16.msra.mxu0 %v3751_v53  ;;  %v3814_v42 = vld [vmem:[%s5276_s5 + $0x10] ss:$28 sps:$4 sm:$0xff]   ;;  %v3818_v44 = vld [vmem:[%s5276_s5 + $0x18] ss:$28 sps:$4 sm:$0xff]   ;;  %v3827_v52 = vld [vmem:[%s5276_s5 + $0x248] ss:$28 sps:$4 sm:$0xff]  }
 0x204   : > { %2554 = vmatprep.subr.bf16.mxu1 %v3756_v54  ;;  %2660 = vmatprep.subr.bf16.mxu0 %v3759_v57  ;;  %v3822_v46 = vld [vmem:[%s5276_s5 + $0x210] ss:$28 sps:$4 sm:$0xff]   ;;  %v3824_v53 = vld [vmem:[%s5276_s5 + $0x80] ss:$28 sps:$4 sm:$0xff]   ;;  %v3828_v54 = vld [vmem:[%s5276_s5 + $0x88] ss:$28 sps:$4 sm:$0xff]  }
 0x205   : > { %v3823_v48 = vld [vmem:[%s5276_s5 + $0x50] ss:$28 sps:$4 sm:$0xff]   ;;  %v3831_v57 = vld [vmem:[%s5276_s5 + $0xbc] ss:$28 sps:$4 sm:$0xff]  }
 0x207   : > { %2555 = vmatpush1.bf16.msra.mxu1 %v3754_v58  ;;  %2661 = vmatpush1.bf16.msra.mxu0 %v3757_v59  ;;  %v3832_v58 = vld [vmem:[%s5276_s5 + $0x280] ss:$28 sps:$4 sm:$0xff]   ;;  %v3829_v59 = vld [vmem:[%s5276_s5 + $0xb8] ss:$28 sps:$4 sm:$0xff]  }
 0x208   : > { %2556 = vmatprep.subr.bf16.mxu1 %v3762_v60  ;;  %2662 = vmatprep.subr.bf16.mxu0 %v3765_v61  ;;  %v3833_v60 = vld [vmem:[%s5276_s5 + $0xc0] ss:$28 sps:$4 sm:$0xff]   ;;  %v3836_v61 = vld [vmem:[%s5276_s5 + $0xf4] ss:$28 sps:$4 sm:$0xff]  }
 0x20b   : > { %2557 = vmatpush1.bf16.msra.mxu1 %v3760_v62  ;;  %2663 = vmatpush1.bf16.msra.mxu0 %v3763_v63  ;;  %v3834_v62 = vld [vmem:[%s5276_s5 + $0xf0] ss:$28 sps:$4 sm:$0xff]   ;;  %v3838_v63 = vld [vmem:[%s5276_s5 + $0xf8] ss:$28 sps:$4 sm:$0xff]  }
 0x20c   : > { %2558 = vmatprep.subr.bf16.mxu1 %v3768_v0  ;;  %2664 = vmatprep.subr.bf16.mxu0 %v3771_v1  ;;  %v3841_v0 = vld [vmem:[%s5276_s5 + $0x12c] ss:$28 sps:$4 sm:$0xff]  }
 0x20d   : > { %v3842_v1 = vld [vmem:[%s5276_s5 + $0x2f0] ss:$28 sps:$4 sm:$0xff]  }
 0x20f   : > { %2559 = vmatpush1.bf16.msra.mxu1 %v3766_v2  ;;  %2665 = vmatpush1.bf16.msra.mxu0 %v3769_v3  ;;  %v3839_v2 = vld [vmem:[%s5276_s5 + $0x128] ss:$28 sps:$4 sm:$0xff]   ;;  %v3843_v3 = vld [vmem:[%s5276_s5 + $0x130] ss:$28 sps:$4 sm:$0xff]  }
 0x210   : > { %2560 = vmatprep.subr.bf16.mxu1 %v3774_v4  ;;  %2666 = vmatprep.subr.bf16.mxu0 %v3777_v5  ;;  %v3846_v4 = vld [vmem:[%s5276_s5 + $0x164] ss:$28 sps:$4 sm:$0xff]  }
 0x211   : > { %v3847_v5 = vld [vmem:[%s5276_s5 + $0x328] ss:$28 sps:$4 sm:$0xff]  }
 0x213   : > { %2561 = vmatpush1.bf16.msra.mxu1 %v3772_v6  ;;  %2667 = vmatpush1.bf16.msra.mxu0 %v3775_v8  ;;  %v3844_v6 = vld [vmem:[%s5276_s5 + $0x160] ss:$28 sps:$4 sm:$0xff]   ;;  %v3848_v8 = vld [vmem:[%s5276_s5 + $0x168] ss:$28 sps:$4 sm:$0xff]  }
 0x214   : > { %2562 = vmatprep.subr.bf16.mxu1 %v3780_v10  ;;  %2668 = vmatprep.subr.bf16.mxu0 %v3783_v14  ;;  %v3851_v10 = vld [vmem:[%s5276_s5 + $0x19c] ss:$28 sps:$4 sm:$0xff]  }
 0x215   : > { %v3852_v14 = vld [vmem:[%s5276_s5 + $0x360] ss:$28 sps:$4 sm:$0xff]  }
 0x217   : > { %2563 = vmatpush1.bf16.msra.mxu1 %v3778_v15  ;;  %2669 = vmatpush1.bf16.msra.mxu0 %v3781_v16  ;;  %v3849_v15 = vld [vmem:[%s5276_s5 + $0x198] ss:$28 sps:$4 sm:$0xff]   ;;  %v3853_v16 = vld [vmem:[%s5276_s5 + $0x1a0] ss:$28 sps:$4 sm:$0xff]  }
 0x218   : > { %2564 = vmatprep.subr.bf16.mxu1 %v3786_v11  ;;  %2670 = vmatprep.subr.bf16.mxu0 %v3789_v17  ;;  %v3856_v11 = vld [vmem:[%s5276_s5 + $0x1d4] ss:$28 sps:$4 sm:$0xff]  }
 0x219   : > { %v3857_v17 = vld [vmem:[%s5276_s5 + $0x558] ss:$28 sps:$4 sm:$0xff]  }
 0x21b   : > { %2565 = vmatpush1.bf16.msra.mxu1 %v3784_v18  ;;  %2671 = vmatpush1.bf16.msra.mxu0 %v3787_v19  ;;  %v3854_v18 = vld [vmem:[%s5276_s5 + $0x1d0] ss:$28 sps:$4 sm:$0xff]   ;;  %v3858_v19 = vld [vmem:[%s5276_s5 + $0x398] ss:$28 sps:$4 sm:$0xff]  }
 0x21c   : > { %2566 = vmatprep.subr.bf16.mxu1 %v3792_v20  ;;  %2672 = vmatprep.subr.bf16.mxu0 %v3795_v21  ;;  %v3861_v20 = vld [vmem:[%s5276_s5 + $0x20c] ss:$28 sps:$4 sm:$0xff]  }
 0x21d   : > { %v3862_v21 = vld [vmem:[%s5276_s5 + $0x590] ss:$28 sps:$4 sm:$0xff]  }
 0x21f   : > { %2567 = vmatpush1.bf16.msra.mxu1 %v3790_v12  ;;  %2673 = vmatpush1.bf16.msra.mxu0 %v3793_v22  ;;  %v3859_v12 = vld [vmem:[%s5276_s5 + $0x208] ss:$28 sps:$4 sm:$0xff]   ;;  %v3863_v22 = vld [vmem:[%s5276_s5 + $0x3d0] ss:$28 sps:$4 sm:$0xff]  }
 0x220   : > { %2568 = vmatprep.subr.bf16.mxu1 %v3798_v23  ;;  %2674 = vmatprep.subr.bf16.mxu0 %v3801_v25  ;;  %v3866_v23 = vld [vmem:[%s5276_s5 + $0x244] ss:$28 sps:$4 sm:$0xff]  }
 0x221   : > { %v3867_v25 = vld [vmem:[%s5276_s5 + $0x5c8] ss:$28 sps:$4 sm:$0xff]  }
 0x223   : > { %2569 = vmatpush1.bf16.msra.mxu1 %v3796_v28  ;;  %2675 = vmatpush1.bf16.msra.mxu0 %v3799_v30  ;;  %v3864_v28 = vld [vmem:[%s5276_s5 + $0x240] ss:$28 sps:$4 sm:$0xff]   ;;  %v3868_v30 = vld [vmem:[%s5276_s5 + $0x408] ss:$28 sps:$4 sm:$0xff]  }
 0x224   : > { %2570 = vmatprep.subr.bf16.mxu1 %v3804_v31  ;;  %2676 = vmatprep.subr.bf16.mxu0 %v3807_v33  ;;  %v3871_v31 = vld [vmem:[%s5276_s5 + $0x27c] ss:$28 sps:$4 sm:$0xff]  }
 0x225   : > { %v3872_v33 = vld [vmem:[%s5276_s5 + $0x600] ss:$28 sps:$4 sm:$0xff]  }
 0x227   : > { %2571 = vmatpush1.bf16.msra.mxu1 %v3802_v34  ;;  %2677 = vmatpush1.bf16.msra.mxu0 %v3805_v35  ;;  %v3869_v34 = vld [vmem:[%s5276_s5 + $0x278] ss:$28 sps:$4 sm:$0xff]   ;;  %v3873_v35 = vld [vmem:[%s5276_s5 + $0x440] ss:$28 sps:$4 sm:$0xff]  }
 0x228   : > { %2572 = vmatprep.subr.bf16.mxu1 %v3810_v36  ;;  %2678 = vmatprep.subr.bf16.mxu0 %v3813_v13  ;;  %v3876_v36 = vld [vmem:[%s5276_s5 + $0x2b4] ss:$28 sps:$4 sm:$0xff]  }
 0x229   : > { %v3877_v13 = vld [vmem:[%s5276_s5 + $0x638] ss:$28 sps:$4 sm:$0xff]  }
 0x22b   : > { %2573 = vmatpush1.bf16.msra.mxu1 %v3808_v38  ;;  %2679 = vmatpush1.bf16.msra.mxu0 %v3811_v39  ;;  %v3874_v38 = vld [vmem:[%s5276_s5 + $0x2b0] ss:$28 sps:$4 sm:$0xff]   ;;  %v3878_v39 = vld [vmem:[%s5276_s5 + $0x478] ss:$28 sps:$4 sm:$0xff]  }
 0x22c   : > { %2701 = vmatprep.subr.bf16.mxu1 %v3816_v40  ;;  %3354 = vmatprep.subr.bf16.mxu0 %v3817_v41  ;;  %v3881_v40 = vld [vmem:[%s5276_s5 + $0x2ec] ss:$28 sps:$4 sm:$0xff]  }
 0x22d   : > { %v3882_v41 = vld [vmem:[%s5276_s5 + $0x670] ss:$28 sps:$4 sm:$0xff]  }
 0x22e   : > { %2575 = vmatmul.mubr.bf16.vlgmr.msra.gmra.mrb[8].mxu1 %v4638_v50  ;;  %2681 = vmatmul.mubr.bf16.vlgmr.msra.gmra.mrb[16].mxu0 %v4638_v50 }
 0x22f   : > { %2584 = vmatprep.mubr.bf16.mxu1 %v4707_v43  ;;  %2690 = vmatprep.mubr.bf16.mxu0 %v4707_v43 }
 0x230   : > { %2702 = vmatpush1.bf16.msra.mxu1 %v3814_v42  ;;  %3355 = vmatpush3.bf16.msra.mxu0 %v3818_v44  ;;  %v3879_v42 = vld [vmem:[%s5276_s5 + $0x2e8] ss:$28 sps:$4 sm:$0xff]   ;;  %v3883_v44 = vld [vmem:[%s5276_s5 + $0x4b0] ss:$28 sps:$4 sm:$0xff]  }
 0x231   : > { %2703 = vmatprep.subr.bf16.mxu1 %v3821_v45  ;;  %3356 = vmatprep.subr.bf16.mxu0 %v3822_v46  ;;  %v3886_v45 = vld [vmem:[%s5276_s5 + $0x324] ss:$28 sps:$4 sm:$0xff]  }
 0x232   : > { %v3887_v46 = vld [vmem:[%s5276_s5 + $0x6a8] ss:$28 sps:$4 sm:$0xff]  }
 0x234   : > { %2704 = vmatpush1.bf16.msra.mxu1 %v3819_v47  ;;  %3357 = vmatpush3.bf16.msra.mxu0 %v3823_v48  ;;  %v3884_v47 = vld [vmem:[%s5276_s5 + $0x320] ss:$28 sps:$4 sm:$0xff]   ;;  %v3888_v48 = vld [vmem:[%s5276_s5 + $0x4e8] ss:$28 sps:$4 sm:$0xff]  }
 0x235   : > { %2705 = vmatprep.subr.bf16.mxu1 %v3826_v51  ;;  %3358 = vmatprep.subr.bf16.mxu0 %v3827_v52  ;;  %v3891_v51 = vld [vmem:[%s5276_s5 + $0x35c] ss:$28 sps:$4 sm:$0xff]  }
 0x236   : > { %2585 = vmatmul.mubr.bf16.gmra.mrb[12].mxu1 %v4689_v37  ;;  %2691 = vmatmul.mubr.bf16.gmra.mrb[20].mxu0 %v4689_v37  ;;  %v3892_v52 = vld [vmem:[%s5276_s5 + $0x6e0] ss:$28 sps:$4 sm:$0xff]  }
 0x237   : > { %2733 = vmatprep.mubr.bf16.mxu1 %v4640_v55  ;;  %2839 = vmatprep.mubr.bf16.mxu0 %v4640_v55  ;;  %v3837_v55 = vld [vmem:[%s5276_s5 + $0x2b8] ss:$28 sps:$4 sm:$0xff]  }
 0x238   : > { %2706 = vmatpush1.bf16.msra.mxu1 %v3824_v53  ;;  %3359 = vmatpush3.bf16.msra.mxu0 %v3828_v54  ;;  %v3889_v53 = vld [vmem:[%s5276_s5 + $0x358] ss:$28 sps:$4 sm:$0xff]   ;;  %v3893_v54 = vld [vmem:[%s5276_s5 + $0x520] ss:$28 sps:$4 sm:$0xff]  }
 0x239   : > { %2707 = vmatprep.subr.bf16.mxu1 %v3831_v57  ;;  %3360 = vmatprep.subr.bf16.mxu0 %v3832_v58  ;;  %v3896_v57 = vld [vmem:[%s5276_s5 + $0x394] ss:$28 sps:$4 sm:$0xff]  }
 0x23a   : > { %v3894_v58 = vld [vmem:[%s5276_s5 + $0x390] ss:$28 sps:$4 sm:$0xff]  }
 0x23c   : > { %2708 = vmatpush1.bf16.msra.mxu1 %v3829_v59  ;;  %3361 = vmatpush3.bf16.msra.mxu0 %v3833_v60  ;;  %v3899_v59 = vld [vmem:[%s5276_s5 + $0x3cc] ss:$28 sps:$4 sm:$0xff]  }
 0x23d   : > { %2709 = vmatprep.subr.bf16.mxu1 %v3836_v61  ;;  %3362 = vmatprep.subr.bf16.mxu0 %v3837_v55  ;;  %v3897_v60 = vld [vmem:[%s5276_s5 + $0x3c8] ss:$28 sps:$4 sm:$0xff]   ;;  %v3903_v55 = vld [vmem:[%s5276_s5 + $0x438] ss:$28 sps:$4 sm:$0xff]  }
 0x23e   : > { %v3902_v61 = vld [vmem:[%s5276_s5 + $0x404] ss:$28 sps:$4 sm:$0xff]  }
 0x240   : > { %2710 = vmatpush1.bf16.msra.mxu1 %v3834_v62  ;;  %3363 = vmatpush3.bf16.msra.mxu0 %v3838_v63  ;;  %v3908_v62 = vld [vmem:[%s5276_s5 + $0x474] ss:$28 sps:$4 sm:$0xff]  }
 0x241   : > { %2711 = vmatprep.subr.bf16.mxu1 %v3841_v0  ;;  %3364 = vmatprep.subr.bf16.mxu0 %v3842_v1  ;;  %v3906_v63 = vld [vmem:[%s5276_s5 + $0x470] ss:$28 sps:$4 sm:$0xff]   ;;  %v3914_v0 = vld [vmem:[%s5276_s5 + $0x4e4] ss:$28 sps:$4 sm:$0xff]  }
 0x242   : > { %v3912_v1 = vld [vmem:[%s5276_s5 + $0x4e0] ss:$28 sps:$4 sm:$0xff]  }
 0x244   : > { %2712 = vmatpush1.bf16.msra.mxu1 %v3839_v2  ;;  %3365 = vmatpush3.bf16.msra.mxu0 %v3843_v3  ;;  %v3917_v2 = vld [vmem:[%s5276_s5 + $0x51c] ss:$28 sps:$4 sm:$0xff]  }
 0x245   : > { %2713 = vmatprep.subr.bf16.mxu1 %v3846_v4  ;;  %3366 = vmatprep.subr.bf16.mxu0 %v3847_v5  ;;  %v3915_v3 = vld [vmem:[%s5276_s5 + $0x518] ss:$28 sps:$4 sm:$0xff]   ;;  %v3918_v5 = vld [vmem:[%s5276_s5 + $0x550] ss:$28 sps:$4 sm:$0xff]  }
 0x246   : > { %v3920_v4 = vld [vmem:[%s5276_s5 + $0x554] ss:$28 sps:$4 sm:$0xff]  }
 0x248   : > { %2714 = vmatpush1.bf16.msra.mxu1 %v3844_v6  ;;  %3367 = vmatpush3.bf16.msra.mxu0 %v3848_v8  ;;  %v3923_v6 = vld [vmem:[%s5276_s5 + $0x58c] ss:$28 sps:$4 sm:$0xff]  }
 0x249   : > { %2715 = vmatprep.subr.bf16.mxu1 %v3851_v10  ;;  %3368 = vmatprep.subr.bf16.mxu0 %v3852_v14  ;;  %v3921_v8 = vld [vmem:[%s5276_s5 + $0x588] ss:$28 sps:$4 sm:$0xff]   ;;  %v3924_v14 = vld [vmem:[%s5276_s5 + $0x5c0] ss:$28 sps:$4 sm:$0xff]  }
 0x24a   : > { %v3926_v10 = vld [vmem:[%s5276_s5 + $0x5c4] ss:$28 sps:$4 sm:$0xff]  }
 0x24c   : > { %2716 = vmatpush1.bf16.msra.mxu1 %v3849_v15  ;;  %3369 = vmatpush3.bf16.msra.mxu0 %v3853_v16  ;;  %v3929_v15 = vld [vmem:[%s5276_s5 + $0x5fc] ss:$28 sps:$4 sm:$0xff]  }
 0x24d   : > { %2717 = vmatprep.subr.bf16.mxu1 %v3856_v11  ;;  %3382 = vmatprep.subr.bf16.mxu0 %v3857_v17  ;;  %v3927_v16 = vld [vmem:[%s5276_s5 + $0x5f8] ss:$28 sps:$4 sm:$0xff]   ;;  %v3930_v17 = vld [vmem:[%s5276_s5 + $0x630] ss:$28 sps:$4 sm:$0xff]  }
 0x24e   : > { %v3932_v11 = vld [vmem:[%s5276_s5 + $0x634] ss:$28 sps:$4 sm:$0xff]  }
 0x24f   : > { %2840 = vmatmul.mubr.bf16.vlgmr.msra.gmra.mrb[24].mxu0 %v4636_v49 }
 0x250   : > { %2718 = vmatpush1.bf16.msra.mxu1 %v3854_v18  ;;  %2847 = vmatprep.mubr.bf16.mxu0 %v4680_v32  ;;  %v3935_v18 = vld [vmem:[%s5276_s5 + $0x66c] ss:$28 sps:$4 sm:$0xff]  }
 0x251   : > { %3383 = vmatpush3.bf16.msra.mxu0 %v3858_v19  ;;  %2719 = vmatprep.subr.bf16.mxu1 %v3861_v20  ;;  %v3933_v19 = vld [vmem:[%s5276_s5 + $0x668] ss:$28 sps:$4 sm:$0xff]  }
 0x252   : > { %3384 = vmatprep.subr.bf16.mxu0 %v3862_v21  ;;  %v3938_v20 = vld [vmem:[%s5276_s5 + $0x6a4] ss:$28 sps:$4 sm:$0xff]  }
 0x253   : > { %v3936_v21 = vld [vmem:[%s5276_s5 + $0x6a0] ss:$28 sps:$4 sm:$0xff]  }
 0x254   : > { %2720 = vmatpush1.bf16.msra.mxu1 %v3859_v12  ;;  %v3941_v12 = vld [vmem:[%s5276_s5 + $0x6dc] ss:$28 sps:$4 sm:$0xff]  }
 0x255   : > { %3385 = vmatpush3.bf16.msra.mxu0 %v3863_v22  ;;  %2721 = vmatprep.subr.bf16.mxu1 %v3866_v23  ;;  %v3939_v22 = vld [vmem:[%s5276_s5 + $0x6d8] ss:$28 sps:$4 sm:$0xff]   ;;  %v5168_v23 = vld [vmem:[%s5277_s6] sm:$0x7f] }
 0x256   : > { %3386 = vmatprep.subr.bf16.mxu0 %v3867_v25  ;;  %v1305_v25 = vrot.slane %v5168_v23, %v4409_v27 }
 0x257   : > { %2848 = vmatmul.mubr.bf16.gmra.mrb[28].mxu0 %v4677_v24 }
 0x258   : > { %2722 = vmatpush1.bf16.msra.mxu1 %v3864_v28  ;;  %2888 = vmatprep.mubr.bf16.mxu0 %v4642_v56  ;;  %v1313_v28 = vrot.slane %v5168_v23, %v552_v7 }
 0x259   : > { %3387 = vmatpush3.bf16.msra.mxu0 %v3868_v30  ;;  %2723 = vmatprep.subr.bf16.mxu1 %v3871_v31  ;;  %v1309_v30 = vrot.slane %v5168_v23, %v4415_v29 }
 0x25a   : > { %3388 = vmatprep.subr.bf16.mxu0 %v3872_v33 }
 0x25c   : > { %2724 = vmatpush1.bf16.msra.mxu1 %v3869_v34 }
 0x25d   : > { %3389 = vmatpush3.bf16.msra.mxu0 %v3873_v35  ;;  %2725 = vmatprep.subr.bf16.mxu1 %v3876_v36 }
 0x25e   : > { %3390 = vmatprep.subr.bf16.mxu0 %v3877_v13 }
 0x260   : > { %2726 = vmatpush1.bf16.msra.mxu1 %v3874_v38 }
 0x261   : > { %3391 = vmatpush3.bf16.msra.mxu0 %v3878_v39  ;;  %2727 = vmatprep.subr.bf16.mxu1 %v3881_v40 }
 0x262   : > { %3392 = vmatprep.subr.bf16.mxu0 %v3882_v41 }
 0x264   : > { %2728 = vmatpush1.bf16.msra.mxu1 %v3879_v42 }
 0x265   : > { %3393 = vmatpush3.bf16.msra.mxu0 %v3883_v44  ;;  %2729 = vmatprep.subr.bf16.mxu1 %v3886_v45 }
 0x266   : > { %3394 = vmatprep.subr.bf16.mxu0 %v3887_v46 }
 0x268   : > { %2730 = vmatpush1.bf16.msra.mxu1 %v3884_v47 }
 0x269   : > { %3395 = vmatpush3.bf16.msra.mxu0 %v3888_v48  ;;  %2731 = vmatprep.subr.bf16.mxu1 %v3891_v51 }
 0x26a   : > { %3396 = vmatprep.subr.bf16.mxu0 %v3892_v52 }
 0x26c   : > { %2732 = vmatpush1.bf16.msra.mxu1 %v3889_v53 }
 0x26d   : > { %3397 = vmatpush3.bf16.msra.mxu0 %v3893_v54  ;;  %2754 = vmatprep.subr.bf16.mxu1 %v3896_v57 }
 0x26f   : > { %2734 = vmatmul.mubr.bf16.vlgmr.msra.gmra.mrb[16].mxu1 %v4636_v49  ;;  %v3900_v49 = vld [vmem:[%s5276_s5 + $0x400] ss:$28 sps:$4 sm:$0xff]  }
 0x270   : > { %2889 = vmatmul.mubr.bf16.vlgmr.msra.gmra.mrb[32].mxu0 %v4638_v50  ;;  %2743 = vmatprep.mubr.bf16.mxu1 %v4680_v32  ;;  %v3905_v32 = vld [vmem:[%s5276_s5 + $0x43c] ss:$28 sps:$4 sm:$0xff]  }
 0x271   : > { %2755 = vmatpush1.bf16.msra.mxu1 %v3894_v58  ;;  %2896 = vmatprep.mubr.bf16.mxu0 %v4707_v43 }
 0x272   : > { %2756 = vmatprep.subr.bf16.mxu1 %v3899_v59 }
 0x275   : > { %2757 = vmatpush1.bf16.msra.mxu1 %v3897_v60 }
 0x276   : > { %2758 = vmatprep.subr.bf16.mxu1 %v3902_v61 }
 0x277   : > { %2744 = vmatmul.mubr.bf16.gmra.mrb[20].mxu1 %v4677_v24  ;;  %v3909_v24 = vld [vmem:[%s5276_s5 + $0x4a8] ss:$28 sps:$4 sm:$0xff]  }
 0x278   : > { %2897 = vmatmul.mubr.bf16.gmra.mrb[36].mxu0 %v4689_v37  ;;  %2786 = vmatprep.mubr.bf16.mxu1 %v4642_v56  ;;  %v3911_v56 = vld [vmem:[%s5276_s5 + $0x4ac] ss:$28 sps:$4 sm:$0xff]  }
 0x279   : > { %2759 = vmatpush1.bf16.msra.mxu1 %v3900_v49 }
 0x27a   : > { %2760 = vmatprep.subr.bf16.mxu1 %v3905_v32 }
 0x27d   : > { %2761 = vmatpush1.bf16.msra.mxu1 %v3903_v55 }
 0x27e   : > { %2762 = vmatprep.subr.bf16.mxu1 %v3908_v62 }
 0x281   : > { %2763 = vmatpush1.bf16.msra.mxu1 %v3906_v63 }
 0x282   : > { %2764 = vmatprep.subr.bf16.mxu1 %v3911_v56 }
 0x285   : > { %2765 = vmatpush1.bf16.msra.mxu1 %v3909_v24 }
 0x286   : > { %2766 = vmatprep.subr.bf16.mxu1 %v3914_v0 }
 0x289   : > { %2767 = vmatpush1.bf16.msra.mxu1 %v3912_v1 }
 0x28a   : > { %2768 = vmatprep.subr.bf16.mxu1 %v3917_v2 }
 0x28d   : > { %2769 = vmatpush1.bf16.msra.mxu1 %v3915_v3 }
 0x28e   : > { %2770 = vmatprep.subr.bf16.mxu1 %v3920_v4 }
 0x291   : > { %2771 = vmatpush1.bf16.msra.mxu1 %v3918_v5 }
 0x292   : > { %2772 = vmatprep.subr.bf16.mxu1 %v3923_v6 }
 0x295   : > { %2773 = vmatpush1.bf16.msra.mxu1 %v3921_v8 }
 0x296   : > { %2774 = vmatprep.subr.bf16.mxu1 %v3926_v10 }
 0x299   : > { %2775 = vmatpush1.bf16.msra.mxu1 %v3924_v14 }
 0x29a   : > { %2776 = vmatprep.subr.bf16.mxu1 %v3929_v15 }
 0x29d   : > { %2777 = vmatpush1.bf16.msra.mxu1 %v3927_v16 }
 0x29e   : > { %2778 = vmatprep.subr.bf16.mxu1 %v3932_v11 }
 0x2a1   : > { %2779 = vmatpush1.bf16.msra.mxu1 %v3930_v17 }
 0x2a2   : > { %2780 = vmatprep.subr.bf16.mxu1 %v3935_v18 }
 0x2a5   : > { %2781 = vmatpush1.bf16.msra.mxu1 %v3933_v19 }
 0x2a6   : > { %2782 = vmatprep.subr.bf16.mxu1 %v3938_v20 }
 0x2a9   : > { %2783 = vmatpush1.bf16.msra.mxu1 %v3936_v21 }
 0x2aa   : > { %2784 = vmatprep.subr.bf16.mxu1 %v3941_v12 }
 0x2ad   : > { %2785 = vmatpush1.bf16.msra.mxu1 %v3939_v22 }
 0x2b0   : > { %2787 = vmatmul.mubr.bf16.vlgmr.msra.gmra.mrb[16].mxu1 %v4638_v50  ;;  %v1317_v50 = vrot.slane %v5168_v23, %v556_v9 }
 0x2b1   : > { %2796 = vmatprep.mubr.bf16.mxu1 %v4707_v43 }
 0x2b8   : > { %2797 = vmatmul.mubr.bf16.gmra.mrb[20].mxu1 %v4689_v37 }
 0x301   : > { %v2576_v37 = vpop.f32.mrb[8].mxu1  ;;  %v2682_v43 = vpop.f32.mrb[16].mxu0 }
 0x302   : > { %v3410_v31 = vadd.f32 %v2576_v37, %v1305_v25  ;;  %v3418_v33 = vadd.f32 %v2682_v43, %v1313_v28  ;;  %v2578_v34 = vpop.f32.mrb[9].mxu1  ;;  %v2684_v35 = vpop.f32.mrb[17].mxu0 }
 0x303   : > { %v3411_v27 = vadd.f32 %v2578_v34, %v1309_v30  ;;  %v3419_v36 = vadd.f32 %v2684_v35, %v1317_v50  ;;  %v2580_v13 = vpop.f32.mrb[10].mxu1  ;;  %v2686_v38 = vpop.f32.mrb[18].mxu0 }
 0x304   : > { %3942 = vtanh.f32 %v3410_v31  ;;  %v3412_v7 = vadd.f32 %v2580_v13, %v1305_v25  ;;  %v2582_v39 = vpop.f32.mrb[11].mxu1  ;;  %v2688_v29 = vpop.f32.mrb[19].mxu0  ;;  %v3420_v40 = vadd.f32 %v2686_v38, %v1313_v28 }
 0x305   : > { %3944 = vtanh.f32 %v3418_v33  ;;  %v3413_v9 = vadd.f32 %v2582_v39, %v1309_v30  ;;  %v3421_v41 = vadd.f32 %v2688_v29, %v1317_v50 }
 0x306   : > { %3946 = vtanh.f32 %v3411_v27 }
 0x307   : > { %3948 = vtanh.f32 %v3419_v36 }
 0x308   : > { %3950 = vtanh.f32 %v3412_v7 }
 0x309   : > { %3952 = vtanh.f32 %v3420_v40  ;;  %v2586_v42 = vpop.f32.mrb[12].mxu1  ;;  %v2692_v44 = vpop.f32.mrb[20].mxu0 }
 0x30a   : > { %3954 = vtanh.f32 %v3413_v9  ;;  %v3414_v45 = vadd.f32 %v2586_v42, %v1305_v25  ;;  %v3422_v46 = vadd.f32 %v2692_v44, %v1313_v28  ;;  %v2588_v47 = vpop.f32.mrb[13].mxu1  ;;  %v2694_v48 = vpop.f32.mrb[21].mxu0 }
 0x30b   : > { %3956 = vtanh.f32 %v3421_v41  ;;  %v3415_v51 = vadd.f32 %v2588_v47, %v1309_v30  ;;  %v3423_v52 = vadd.f32 %v2694_v48, %v1317_v50  ;;  %v2590_v53 = vpop.f32.mrb[14].mxu1  ;;  %v2696_v54 = vpop.f32.mrb[22].mxu0 }
 0x30c   : > { %3958 = vtanh.f32 %v3414_v45  ;;  %v3416_v57 = vadd.f32 %v2590_v53, %v1305_v25  ;;  %v2592_v58 = vpop.f32.mrb[15].mxu1  ;;  %v2698_v59 = vpop.f32.mrb[23].mxu0  ;;  %v3424_v60 = vadd.f32 %v2696_v54, %v1313_v28  ;;  %v1320_v53 = vsub.s32 4, %v4406_v26 }
 0x30d   : > { %3960 = vtanh.f32 %v3422_v46  ;;  %v3417_v49 = vadd.f32 %v2592_v58, %v1309_v30  ;;  %v3425_v55 = vadd.f32 %v2698_v59, %v1317_v50  ;;  %v1328_v30 = vsub.s32 6, %v4406_v26 }
 0x30e   : > { %v3943_v61 = vpop.eup %3942  ;;  %3962 = vtanh.f32 %v3415_v51  ;;  %v1324_v54 = vsub.s32 5, %v4406_v26 }
 0x30f   : > { %v3945_v32 = vpop.eup %3944  ;;  %2933 = vst [vmem:[%s5183_s13] sm:$0xff] %v3943_v61  ;;  %3964 = vtanh.f32 %v3423_v52  ;;  %v1329_v50 = vrot.slane %v5168_v23, %v1328_v30 }
 0x310   : > { %v3947_v62 = vpop.eup %3946  ;;  %2935 = vst [vmem:[%s5183_s13 + $0x10] sm:$0xff] %v3945_v32  ;;  %3966 = vtanh.f32 %v3416_v57  ;;  %v1321_v57 = vrot.slane %v5168_v23, %v1320_v53  ;;  %v1325_v58 = vrot.slane %v5168_v23, %v1324_v54 }
 0x311   : > { %v3949_v63 = vpop.eup %3948  ;;  %2934 = vst [vmem:[%s5183_s13 + $0x8] sm:$0xff] %v3947_v62  ;;  %3968 = vtanh.f32 %v3424_v60 }
 0x312   : > { %v3951_v56 = vpop.eup %3950  ;;  %2936 = vst [vmem:[%s5183_s13 + $0x18] sm:$0xff] %v3949_v63  ;;  %3970 = vtanh.f32 %v3417_v49 }
 0x313   : > { %v3953_v24 = vpop.eup %3952  ;;  %2941 = vst [vmem:[%s5183_s13 + $0x38] sm:$0xff] %v3951_v56  ;;  %3972 = vtanh.f32 %v3425_v55 }
 0x314   : > { %v3955_v0 = vpop.eup %3954  ;;  %2943 = vst [vmem:[%s5183_s13 + $0x48] sm:$0xff] %v3953_v24 }
 0x315   : > { %v3957_v1 = vpop.eup %3956  ;;  %2942 = vst [vmem:[%s5183_s13 + $0x40] sm:$0xff] %v3955_v0 }
 0x316   : > { %v3959_v2 = vpop.eup %3958  ;;  %2944 = vst [vmem:[%s5183_s13 + $0x50] sm:$0xff] %v3957_v1 }
 0x317   : > { %v3961_v3 = vpop.eup %3960  ;;  %2948 = vst [vmem:[%s5183_s13 + $0x70] sm:$0xff] %v3959_v2 }
 0x318   : > { %v3963_v4 = vpop.eup %3962  ;;  %2950 = vst [vmem:[%s5183_s13 + $0x80] sm:$0xff] %v3961_v3 }
 0x319   : > { %v3965_v5 = vpop.eup %3964  ;;  %2949 = vst [vmem:[%s5183_s13 + $0x78] sm:$0xff] %v3963_v4 }
 0x31a   : > { %v3967_v6 = vpop.eup %3966  ;;  %2951 = vst [vmem:[%s5183_s13 + $0x88] sm:$0xff] %v3965_v5 }
 0x31b   : > { %v3969_v8 = vpop.eup %3968  ;;  %2955 = vst [vmem:[%s5183_s13 + $0xa8] sm:$0xff] %v3967_v6 }
 0x31c   : > { %v3971_v10 = vpop.eup %3970  ;;  %2957 = vst [vmem:[%s5183_s13 + $0xb8] sm:$0xff] %v3969_v8 }
 0x31d   : > { %v3973_v14 = vpop.eup %3972  ;;  %2956 = vst [vmem:[%s5183_s13 + $0xb0] sm:$0xff] %v3971_v10 }
 0x31e   : > { %2958 = vst [vmem:[%s5183_s13 + $0xc0] sm:$0xff] %v3973_v14 }
 0x322   : > { %v3370_v15 = vpop.f32.mrb[24].mxu0 }
 0x323   : > { %v3371_v16 = vpop.f32.mrb[25].mxu0 }
 0x324   : > { %v3372_v11 = vadd.f32 %v3371_v16, %v3370_v15  ;;  %v3373_v17 = vpop.f32.mrb[26].mxu0 }
 0x325   : > { %v3374_v18 = vpop.f32.mrb[27].mxu0 }
 0x326   : > { %v3375_v19 = vadd.f32 %v3374_v18, %v3373_v17  ;;  %v2842_v31 = vadd.f32 %v3372_v11, %v1329_v50 }
 0x328   : > { %v2845_v27 = vadd.f32 %v3375_v19, %v1329_v50 }
 0x32a   : > { %v3376_v20 = vpop.f32.mrb[28].mxu0 }
 0x32b   : > { %v3377_v21 = vpop.f32.mrb[29].mxu0 }
 0x32c   : > { %v3378_v12 = vadd.f32 %v3377_v21, %v3376_v20  ;;  %v3379_v22 = vpop.f32.mrb[30].mxu0 }
 0x32d   : > { %v3380_v25 = vpop.f32.mrb[31].mxu0 }
 0x32e   : > { %v3381_v28 = vadd.f32 %v3380_v25, %v3379_v22  ;;  %v2850_v29 = vadd.f32 %v3378_v12, %v1329_v50 }
 0x330   : > { %v2853_v42 = vadd.f32 %v3381_v28, %v1329_v50 }
 0x343   : > { %v3398_v37 = vpop.f32.mrb[32].mxu0 }
 0x344   : > { %v3399_v43 = vpop.f32.mrb[33].mxu0 }
 0x345   : > { %v3400_v33 = vadd.f32 %v3399_v43, %v3398_v37  ;;  %v3401_v34 = vpop.f32.mrb[34].mxu0 }
 0x346   : > { %v3402_v35 = vpop.f32.mrb[35].mxu0 }
 0x347   : > { %v2891_v36 = vadd.f32 %v3400_v33, %v2842_v31  ;;  %v3403_v13 = vadd.f32 %v3402_v35, %v3401_v34 }
 0x349   : > { %3974 = vtanh.f32 %v2891_v36  ;;  %v2894_v38 = vadd.f32 %v3403_v13, %v2845_v27 }
 0x34b   : > { %3976 = vtanh.f32 %v2894_v38  ;;  %v3404_v7 = vpop.f32.mrb[36].mxu0 }
 0x34c   : > { %v3405_v39 = vpop.f32.mrb[37].mxu0 }
 0x34d   : > { %v3406_v40 = vadd.f32 %v3405_v39, %v3404_v7  ;;  %v3407_v9 = vpop.f32.mrb[38].mxu0 }
 0x34e   : > { %v3408_v41 = vpop.f32.mrb[39].mxu0 }
 0x34f   : > { %v2899_v44 = vadd.f32 %v3406_v40, %v2850_v29  ;;  %v3409_v45 = vadd.f32 %v3408_v41, %v3407_v9 }
 0x351   : > { %3978 = vtanh.f32 %v2899_v44  ;;  %v2902_v46 = vadd.f32 %v3409_v45, %v2853_v42 }
 0x353   : > { %v3975_v47 = vpop.eup %3974  ;;  %3980 = vtanh.f32 %v2902_v46 }
 0x354   : > { %2940 = vst.msk [vmem:[%s5183_s13 + $0x30] sm:$0xff] %vm2939_vm8, %v3975_v47 }
 0x355   : > { %v3977_v48 = vpop.eup %3976 }
 0x356   : > { %2947 = vst.msk [vmem:[%s5183_s13 + $0x68] sm:$0xff] %vm2939_vm8, %v3977_v48 }
 0x35b   : > { %v3979_v51 = vpop.eup %3978 }
 0x35c   : > { %2954 = vst.msk [vmem:[%s5183_s13 + $0xa0] sm:$0xff] %vm2939_vm8, %v3979_v51 }
 0x35d   : > { %v3981_v52 = vpop.eup %3980 }
 0x35e   : > { %2961 = vst.msk [vmem:[%s5183_s13 + $0xd8] sm:$0xff] %vm2939_vm8, %v3981_v52 }
 0x383   : > { %v2788_v59 = vpop.f32.mrb[16].mxu1 }
 0x384   : > { %v3426_v60 = vadd.f32 %v2788_v59, %v1321_v57  ;;  %v2790_v61 = vpop.f32.mrb[17].mxu1 }
 0x385   : > { %v3427_v49 = vadd.f32 %v2790_v61, %v1325_v58  ;;  %v2792_v32 = vpop.f32.mrb[18].mxu1 }
 0x386   : > { %3982 = vtanh.f32 %v3426_v60  ;;  %v3428_v55 = vadd.f32 %v2792_v32, %v1321_v57  ;;  %v2794_v62 = vpop.f32.mrb[19].mxu1 }
 0x387   : > { %3984 = vtanh.f32 %v3427_v49  ;;  %v3429_v63 = vadd.f32 %v2794_v62, %v1325_v58 }
 0x388   : > { %3986 = vtanh.f32 %v3428_v55 }
 0x389   : > { %3988 = vtanh.f32 %v3429_v63 }
 0x38b   : > { %v2798_v56 = vpop.f32.mrb[20].mxu1 }
 0x38c   : > { %v3430_v26 = vadd.f32 %v2798_v56, %v1321_v57  ;;  %v2800_v24 = vpop.f32.mrb[21].mxu1 }
 0x38d   : > { %v3431_v0 = vadd.f32 %v2800_v24, %v1325_v58  ;;  %v2802_v23 = vpop.f32.mrb[22].mxu1 }
 0x38e   : > { %3990 = vtanh.f32 %v3430_v26  ;;  %v3432_v1 = vadd.f32 %v2802_v23, %v1321_v57  ;;  %v2804_v2 = vpop.f32.mrb[23].mxu1 }
 0x38f   : > { %3992 = vtanh.f32 %v3431_v0  ;;  %v3433_v3 = vadd.f32 %v2804_v2, %v1325_v58 }
 0x390   : > { %v3983_v4 = vpop.eup %3982  ;;  %3994 = vtanh.f32 %v3432_v1 }
 0x391   : > { %v3985_v5 = vpop.eup %3984  ;;  %2937 = vst [vmem:[%s5183_s13 + $0x20] sm:$0xff] %v3983_v4  ;;  %3996 = vtanh.f32 %v3433_v3 }
 0x392   : > { %v3987_v6 = vpop.eup %3986  ;;  %2938 = vst [vmem:[%s5183_s13 + $0x28] sm:$0xff] %v3985_v5 }
 0x393   : > { %v3989_v8 = vpop.eup %3988  ;;  %2945 = vst [vmem:[%s5183_s13 + $0x58] sm:$0xff] %v3987_v6 }
 0x394   : > { %2946 = vst [vmem:[%s5183_s13 + $0x60] sm:$0xff] %v3989_v8 }
 0x398   : > { %v3991_v10 = vpop.eup %3990 }
 0x399   : > { %v3993_v14 = vpop.eup %3992  ;;  %2952 = vst [vmem:[%s5183_s13 + $0x90] sm:$0xff] %v3991_v10 }
 0x39a   : > { %v3995_v15 = vpop.eup %3994  ;;  %2953 = vst [vmem:[%s5183_s13 + $0x98] sm:$0xff] %v3993_v14 }
 0x39b   : > { %v3997_v16 = vpop.eup %3996  ;;  %2959 = vst [vmem:[%s5183_s13 + $0xc8] sm:$0xff] %v3995_v15 }
 0x39c   : > { %2960 = vst [vmem:[%s5183_s13 + $0xd0] sm:$0xff] %v3997_v16 }
 0x39d   : > { %4011 = shalt.err (!%p4008_p3)
}
 0x39e   : > { %s4012_s17 = scalar_lea.hbm %s5224_s9, 3584  ;;  %s4016_s20 = scalar_lea.hbm %s5278_s7, 7168 }
 0x39f   : > { %p4013_p4 = scmp.ne.s32.totalorder %s5224_s9, %s4012_s17  ;;  %p4017_p9 = scmp.lt.u32.totalorder %s5224_s9, %s5278_s7 }
 0x3a0   : > { %p4018_p10 = scmp.lt.u32.totalorder %s4016_s20, %s4012_s17  ;;  %p4020_p12 = scmp.lt.u32.totalorder %s4012_s17, %s5224_s9 }
 0x3a1   : > { %p4014_p7 = pnand %p4013_p4, %p4144_p5 }
 0x3a2   : > { %p4019_p11 = por %p4018_p10, %p4017_p9 }
 0x3a3   : > { %p4015_p8 = pneg %p4014_p7 }
 0x3a4   : > { %p4021_p13 = por %p4020_p12, %p4019_p11 }
 0x3a6   : > { %p4022_p0 = pnand %p4021_p13, %p4015_p8 }
 0x3a8   : > { %4025 = shalt.err (!%p4022_p0)
}
 0x3a9   : > { %s4064_s23 = smov 896   ;;  %s4065_s29 = smov 56  }
 0x3aa   : > { %3460 = dma.vmem_to_hbm [thread:$0]  (%p4144_p5), %s5218_s21, 3584, %s5224_s9, %s5230_s28, %s4064_s23, %s4064_s23, %s4065_s29  }
 0x3ab PF: > { %p3466_p1 = scmp.ge.s32.totalorder %s4060_s27, 2  ;;  %s2992_s14 = sand.u32 1, %s4048_s24  }
 0x3ac   : > { %s2993_s15 = scalar_lea.sflag [#allocation3], %s2992_s14 }
 0x3ad   : > { %p3463_p2 = pnand %p3466_p1, %p4148_p6 }
 0x3af   : > { %4043 = dma.done.wait (!%p3463_p2), %s2993_s15, 3584  }
 0x3b0   : > { %4045 = vsyncadd (!%p3463_p2), %s2993_s15, 4294963712  ;;  %p17_p3 = scmp.ge.s32.totalorder %s4131_s30, 4   ;;  %s5281_s24 = smov %s4052_s25 }
 0x3b1   : > { %s5282_s25 = smov %s4056_s26  ;;  %s5283_s26 = smov %s4142_s10 }
 0x3b2   : > { %s5284_s27 = smov %s4131_s30  ;;  %19 = sbr.rel (!%p17_p3) target bundleno = 3 (0x3), region = 83 }
 0x3b9   :  { %2998 = vsyncpa [#allocation3], 1 }
 0x3ba   :  { %3000 = vsyncpa [#allocation3 + $0x1], 1 }

</bundles_post_ra>
